<compile_context>
chip_gen: v7x
topology: tpu7x:2x2x1
jax: 0.10.0
libtpu: 0.0.40
codegen_flags: <defaults>
</compile_context>

<pallas_src>
import functools
import math

import jax
import jax.numpy as jnp
from jax.experimental import pallas as pl
from jax.experimental.pallas import tpu as pltpu


# ----------------------------------------------------------------------------
# Fused Pallas kernel: every transformer layer is one grid step; final linear
# runs on the last step.  Activations live in a VMEM scratch across steps.
# ----------------------------------------------------------------------------
def holger_gpt_kernel(x0_ref, mask_ref, w1_ref, b1_ref, w2_ref, b2_ref,
                      n1_ref, wqkv_ref, wv2_ref, n2_ref, wout_ref, bout_ref,
                      o_ref, x_scr, *, num_heads):
    layer = pl.program_id(0)
    num_layers = pl.num_programs(0)

    B, T, E = x_scr.shape
    BT = B * T
    K = E // num_heads
    eps = jnp.float32(1e-8)
    scale = jnp.float32(K ** (-0.5))

    # Load the embedded+positional input once, at the first layer.
    @pl.when(layer == 0)
    def _():
        x_scr[...] = x0_ref[...]

    x = x_scr[...]                                    # (B, T, E) f32

    # ---------------- FFN + residual (rows = B*T folded) --------------------
    x2 = x.reshape(BT, E)
    h = jnp.dot(x2, w1_ref[0], preferred_element_type=jnp.float32) + b1_ref[0]
    # exact GELU (PyTorch nn.GELU default); dropout is identity at inference
    h = 0.5 * h * (1.0 + jax.lax.erf(h * jnp.float32(1.0 / math.sqrt(2.0))))
    f = jnp.dot(h, w2_ref[0], preferred_element_type=jnp.float32) + b2_ref[0]
    x2 = x2 + f

    # ---------------- RMSNorm 1: x * rsqrt(mean(x^2)+eps) * scale(T,E) -------
    x = x2.reshape(B, T, E)
    x = x * jax.lax.rsqrt(jnp.mean(x * x, axis=-1, keepdims=True) + eps)
    x = x * n1_ref[0]

    # ---------------- Sequential multi-head attention ------------------------
    # MultiHeadAttention applies heads sequentially with per-head residuals,
    # and TransformerBlock then adds an additional outer residual.
    mask = mask_ref[...]                              # (T, T) additive 0 / -1e30
    wqkv = wqkv_ref[0]                                # (E, num_heads*3K) packed
    wv2 = wv2_ref[0]                                  # (num_heads*K, E) packed
    a = x
    for hd in range(num_heads):                       # static unrolled
        a2 = a.reshape(BT, E)
        c0 = hd * 3 * K
        # fused q/k/v1 projection: one (BT,E)@(E,3K) matmul per head
        qkv = jnp.dot(a2, wqkv[:, c0:c0 + 3 * K],
                      preferred_element_type=jnp.float32)        # (BT, 3K)
        q = qkv[:, 0 * K:1 * K].reshape(B, T, K)
        k = qkv[:, 1 * K:2 * K].reshape(B, T, K)
        v = jnp.dot(qkv[:, 2 * K:3 * K], wv2[hd * K:(hd + 1) * K, :],
                    preferred_element_type=jnp.float32).reshape(B, T, E)

        att = jax.lax.dot_general(
            q, k, (((2,), (2,)), ((0,), (0,))),
            preferred_element_type=jnp.float32) * scale + mask   # (B, T, T)
        m = jnp.max(att, axis=-1, keepdims=True)
        p = jnp.exp(att - m)
        att = p * pl.reciprocal(jnp.sum(p, axis=-1, keepdims=True), approx=True)

        upd = jax.lax.dot_general(
            att, v, (((2,), (1,)), ((0,), (0,))),
            preferred_element_type=jnp.float32)                  # (B, T, E)
        a = a + upd
    x = x + a                                          # outer block residual

    # ---------------- RMSNorm 2 ----------------------------------------------
    x = x * jax.lax.rsqrt(jnp.mean(x * x, axis=-1, keepdims=True) + eps)
    x = x * n2_ref[0]

    x_scr[...] = x

    # ---------------- Final projection, fused into the last layer step -------
    @pl.when(layer == num_layers - 1)
    def _():
        V = o_ref.shape[-1]
        wout = wout_ref[...]                           # (T, E, V)
        acc = jnp.zeros((B, V), jnp.float32)
        for t in range(T):                             # == x.reshape(B,T*E) @ W
            acc = acc + jnp.dot(x[:, t, :], wout[t],
                                preferred_element_type=jnp.float32)
        o_ref[...] = (acc + bout_ref[...]).astype(o_ref.dtype)


# ----------------------------------------------------------------------------
# Single pallas_call wrapper for the whole model body
# ----------------------------------------------------------------------------
def run_holger_gpt(x, mask, w1, b1, w2, b2, n1, wqkv, wv2, n2, w_out, b_out,
                   *, num_heads):
    L, E, H = w1.shape
    B, T, _ = x.shape
    V = w_out.shape[-1]
    QKV = wqkv.shape[-1]
    HK = wv2.shape[1]

    kernel = functools.partial(holger_gpt_kernel, num_heads=num_heads)

    grid_spec = pltpu.PrefetchScalarGridSpec(
        num_scalar_prefetch=0,
        grid=(L,),
        in_specs=[
            pl.BlockSpec((B, T, E), lambda l: (0, 0, 0)),     # x0 (embedded+PE)
            pl.BlockSpec((T, T), lambda l: (0, 0)),           # additive mask
            pl.BlockSpec((1, E, H), lambda l: (l, 0, 0)),     # W1  (per layer)
            pl.BlockSpec((1, 1, H), lambda l: (l, 0, 0)),     # b1
            pl.BlockSpec((1, H, E), lambda l: (l, 0, 0)),     # W2
            pl.BlockSpec((1, 1, E), lambda l: (l, 0, 0)),     # b2
            pl.BlockSpec((1, T, E), lambda l: (l, 0, 0)),     # norm1 scale
            pl.BlockSpec((1, E, QKV), lambda l: (l, 0, 0)),   # packed Wq|Wk|Wv1
            pl.BlockSpec((1, HK, E), lambda l: (l, 0, 0)),    # packed Wv2
            pl.BlockSpec((1, T, E), lambda l: (l, 0, 0)),     # norm2 scale
            pl.BlockSpec((T, E, V), lambda l: (0, 0, 0)),     # final W (T,E,V)
            pl.BlockSpec((1, V), lambda l: (0, 0)),           # final bias
        ],
        out_specs=pl.BlockSpec((B, V), lambda l: (0, 0)),
        scratch_shapes=[pltpu.VMEM((B, T, E), jnp.float32)],  # resident x carry
    )

    return pl.pallas_call(
        kernel,
        out_shape=jax.ShapeDtypeStruct((B, V), jnp.float32),
        grid_spec=grid_spec,
        compiler_params=pltpu.CompilerParams(
            dimension_semantics=("arbitrary",)),
    )(x, mask, w1, b1, w2, b2, n1, wqkv, wv2, n2, w_out, b_out)


# ----------------------------------------------------------------------------
# Deterministic parameter construction (synthetic init, no checkpoint load)
# ----------------------------------------------------------------------------
def xavier_uniform(key, shape):
    bound = math.sqrt(6.0 / (shape[0] + shape[1]))
    return jax.random.uniform(key, shape, jnp.float32, -bound, bound)


def make_positional_encoding(T, E):
    pos = jnp.arange(T, dtype=jnp.float32)[:, None]
    div = jnp.exp(jnp.arange(0, E, 2, dtype=jnp.float32)
                  * (-math.log(10000.0) / E))
    pe = jnp.zeros((T, E), jnp.float32)
    pe = pe.at[:, 0::2].set(jnp.sin(pos * div))
    pe = pe.at[:, 1::2].set(jnp.cos(pos * div))
    return pe


def init_params(key, num_layers, E, num_heads, H, T, V):
    K = E // num_heads
    k_emb, k_lin, *k_layers = jax.random.split(key, 2 + num_layers)

    embedding = jax.random.normal(k_emb, (V, E), jnp.float32)
    pe = make_positional_encoding(T, E)

    w1s, b1s, w2s, b2s, n1s, n2s, wqkvs, wv2s = ([] for _ in range(8))
    for kl in k_layers:
        ks = jax.random.split(kl, 6)
        w1s.append(xavier_uniform(ks[0], (E, H)))        # linear_1.weight^T
        b1s.append(jnp.zeros((1, H), jnp.float32))
        w2s.append(xavier_uniform(ks[1], (H, E)))        # linear_2.weight^T
        b2s.append(jnp.zeros((1, E), jnp.float32))
        n1s.append(jnp.ones((T, E), jnp.float32))        # RMSNorm scales
        n2s.append(jnp.ones((T, E), jnp.float32))
        kq = jax.random.split(ks[2], num_heads)
        kk = jax.random.split(ks[3], num_heads)
        kv1 = jax.random.split(ks[4], num_heads)
        kv2 = jax.random.split(ks[5], num_heads)
        # lane-dense packing: per head, columns [q | k | v1] each of width K
        per_head = [jnp.concatenate([xavier_uniform(kq[h], (E, K)),
                                     xavier_uniform(kk[h], (E, K)),
                                     xavier_uniform(kv1[h], (E, K))], axis=1)
                    for h in range(num_heads)]
        wqkvs.append(jnp.concatenate(per_head, axis=1))  # (E, num_heads*3K)
        wv2s.append(jnp.concatenate(
            [xavier_uniform(kv2[h], (K, E)) for h in range(num_heads)],
            axis=0))                                     # (num_heads*K, E)

    stack = lambda xs: jnp.stack(xs, axis=0)
    blocks = dict(w1=stack(w1s), b1=stack(b1s), w2=stack(w2s), b2=stack(b2s),
                  n1=stack(n1s), wqkv=stack(wqkvs), wv2=stack(wv2s),
                  n2=stack(n2s))

    # final linear weight^T, reshaped to (T, E, V) -- matches the T-major,
    # E-minor flatten of x.reshape(-1, T*E) in the PyTorch reference.
    w_out = xavier_uniform(k_lin, (E * T, V)).reshape(T, E, V)
    b_out = jnp.zeros((1, V), jnp.float32)

    # additive causal mask: 0 keep / -1e30 masked (== masked_fill(-inf) result)
    row = jnp.arange(T)[:, None]
    col = jnp.arange(T)[None, :]
    mask = jnp.where(col > row, jnp.float32(-1e30), jnp.float32(0.0))

    return embedding, pe, mask, blocks, (w_out, b_out)


# ----------------------------------------------------------------------------
# Full model forward
# ----------------------------------------------------------------------------
def holger_gpt_forward(tokens, embedding, pe, mask, blocks, final_linear,
                       num_heads):
    # Embedding gather + positional encoding (plain-JAX glue).
    x = jnp.take(embedding, tokens, axis=0) + pe[None, :, :]    # (B, T, E)
    w_out, b_out = final_linear
    return run_holger_gpt(
        x, mask, blocks["w1"], blocks["b1"], blocks["w2"], blocks["b2"],
        blocks["n1"], blocks["wqkv"], blocks["wv2"], blocks["n2"],
        w_out, b_out, num_heads=num_heads)


if __name__ == "__main__":
    # Small, forward-consistent shapes.
    num_layers = 2
    embedding_dim = 32
    num_heads = 4
    hidden_dim = 64
    context_length = 8        # seq length must equal context_length (final reshape)
    vocab_size = 16
    batch = 2

    key = jax.random.PRNGKey(0)
    k_params, k_tokens = jax.random.split(key)

    embedding, pe, mask, blocks, final_linear = init_params(
        k_params, num_layers, embedding_dim, num_heads, hidden_dim,
        context_length, vocab_size)

    tokens = jax.random.randint(k_tokens, (batch, context_length), 0, vocab_size)

    forward = jax.jit(lambda toks, emb, p, m, blk, fin: holger_gpt_forward(
        toks, emb, p, m, blk, fin, num_heads))

    logits = forward(tokens, embedding, pe, mask, blocks, final_linear)
    jax.block_until_ready(logits)
    assert logits.shape == (batch, vocab_size)
    assert bool(jnp.all(jnp.isfinite(logits)))
    print("KERNEL_OK")
</pallas_src>

<mosaic_0001>
module attributes {stable_mosaic.version = 11 : i64} {
  func.func @holger_gpt_kernel(%arg0: i32, %arg1: memref<2x8x32xf32, #tpu.memory_space<vmem>>, %arg2: memref<8x8xf32, #tpu.memory_space<vmem>>, %arg3: memref<1x32x64xf32, #tpu.memory_space<vmem>>, %arg4: memref<1x1x64xf32, #tpu.memory_space<vmem>>, %arg5: memref<1x64x32xf32, #tpu.memory_space<vmem>>, %arg6: memref<1x1x32xf32, #tpu.memory_space<vmem>>, %arg7: memref<1x8x32xf32, #tpu.memory_space<vmem>>, %arg8: memref<1x32x96xf32, #tpu.memory_space<vmem>>, %arg9: memref<1x32x32xf32, #tpu.memory_space<vmem>>, %arg10: memref<1x8x32xf32, #tpu.memory_space<vmem>>, %arg11: memref<8x32x16xf32, #tpu.memory_space<vmem>>, %arg12: memref<1x16xf32, #tpu.memory_space<vmem>>, %arg13: memref<2x16xf32, #tpu.memory_space<vmem>>, %arg14: memref<2x8x32xf32, #tpu.memory_space<vmem>>) attributes {dimension_semantics = [#tpu.dimension_semantics<arbitrary>], iteration_bounds = array<i64: 2>, scalar_prefetch = 0 : i64, scratch_operands = 1 : i64, tpu.core_type = #tpu.core_type<tc>, window_params = [{pipeline_mode = #tpu.pipeline_mode<synchronous>, transform_indices = @transform_0, window_bounds = array<i64: 2, 8, 32>}, {pipeline_mode = #tpu.pipeline_mode<synchronous>, transform_indices = @transform_1, window_bounds = array<i64: 8, 8>}, {transform_indices = @transform_2, window_bounds = array<i64: 1, 32, 64>}, {transform_indices = @transform_3, window_bounds = array<i64: 1, 1, 64>}, {transform_indices = @transform_4, window_bounds = array<i64: 1, 64, 32>}, {transform_indices = @transform_5, window_bounds = array<i64: 1, 1, 32>}, {transform_indices = @transform_6, window_bounds = array<i64: 1, 8, 32>}, {transform_indices = @transform_7, window_bounds = array<i64: 1, 32, 96>}, {transform_indices = @transform_8, window_bounds = array<i64: 1, 32, 32>}, {transform_indices = @transform_9, window_bounds = array<i64: 1, 8, 32>}, {pipeline_mode = #tpu.pipeline_mode<synchronous>, transform_indices = @transform_10, window_bounds = array<i64: 8, 32, 16>}, {pipeline_mode = #tpu.pipeline_mode<synchronous>, transform_indices = @transform_11, window_bounds = array<i64: 1, 16>}, {pipeline_mode = #tpu.pipeline_mode<synchronous>, transform_indices = @transform_12, window_bounds = array<i64: 2, 16>}]} {
    %c0_i32 = arith.constant 0 : i32
    %0 = arith.cmpi eq, %arg0, %c0_i32 : i32
    %1 = arith.extui %0 : i1 to i32
    %c0_i32_0 = arith.constant 0 : i32
    %2 = arith.cmpi ne, %1, %c0_i32_0 : i32
    scf.if %2 {
      %c0_71 = arith.constant 0 : index
      %c0_72 = arith.constant 0 : index
      %c0_73 = arith.constant 0 : index
      %185 = vector.load %arg1[%c0_71, %c0_72, %c0_73] : memref<2x8x32xf32, #tpu.memory_space<vmem>>, vector<2x8x32xf32>
      %c0_74 = arith.constant 0 : index
      %c0_75 = arith.constant 0 : index
      %c0_76 = arith.constant 0 : index
      %186 = vector.load %arg14[%c0_74, %c0_75, %c0_76] : memref<2x8x32xf32, #tpu.memory_space<vmem>>, vector<2x8x32xf32>
      tpu.vector_store %arg14[%c0_74, %c0_75, %c0_76], %185 {strides = array<i32>} : memref<2x8x32xf32, #tpu.memory_space<vmem>>, vector<2x8x32xf32>,
    } else {
    }
    %c0 = arith.constant 0 : index
    %c0_1 = arith.constant 0 : index
    %c0_2 = arith.constant 0 : index
    %3 = vector.load %arg14[%c0, %c0_1, %c0_2] : memref<2x8x32xf32, #tpu.memory_space<vmem>>, vector<2x8x32xf32>
    %4 = vector.shape_cast %3 : vector<2x8x32xf32> to vector<16x32xf32>
    %c0_3 = arith.constant 0 : index
    %c0_4 = arith.constant 0 : index
    %c0_5 = arith.constant 0 : index
    %5 = vector.load %arg3[%c0_3, %c0_4, %c0_5] : memref<1x32x64xf32, #tpu.memory_space<vmem>>, vector<1x32x64xf32>
    %6 = vector.shape_cast %5 : vector<1x32x64xf32> to vector<32x64xf32>
    %cst = arith.constant dense<0.000000e+00> : vector<16x64xf32>
    %7 = tpu.matmul %4, %6, %cst {dimension_numbers = #tpu.dot_dimension_numbers<[1], [0], [0], [1], [0, 0, 1, 1], [], []>} : vector<16x32xf32>, vector<32x64xf32>, vector<16x64xf32> -> vector<16x64xf32>
    %c0_6 = arith.constant 0 : index
    %c0_7 = arith.constant 0 : index
    %c0_8 = arith.constant 0 : index
    %8 = vector.load %arg4[%c0_6, %c0_7, %c0_8] : memref<1x1x64xf32, #tpu.memory_space<vmem>>, vector<1x1x64xf32>
    %9 = vector.shape_cast %8 : vector<1x1x64xf32> to vector<1x64xf32>
    %10 = vector.broadcast %9 : vector<1x64xf32> to vector<16x64xf32>
    %11 = arith.addf %7, %10 : vector<16x64xf32>
    %cst_9 = arith.constant 5.000000e-01 : f32
    %12 = vector.broadcast %cst_9 : f32 to vector<16x64xf32>
    %13 = arith.mulf %12, %11 : vector<16x64xf32>
    %cst_10 = arith.constant 0.707106769 : f32
    %14 = vector.broadcast %cst_10 : f32 to vector<16x64xf32>
    %15 = arith.mulf %11, %14 : vector<16x64xf32>
    %16 = math.erf %15 : vector<16x64xf32>
    %cst_11 = arith.constant 1.000000e+00 : f32
    %17 = vector.broadcast %cst_11 : f32 to vector<16x64xf32>
    %18 = arith.addf %17, %16 : vector<16x64xf32>
    %19 = arith.mulf %13, %18 : vector<16x64xf32>
    %c0_12 = arith.constant 0 : index
    %c0_13 = arith.constant 0 : index
    %c0_14 = arith.constant 0 : index
    %20 = vector.load %arg5[%c0_12, %c0_13, %c0_14] : memref<1x64x32xf32, #tpu.memory_space<vmem>>, vector<1x64x32xf32>
    %21 = vector.shape_cast %20 : vector<1x64x32xf32> to vector<64x32xf32>
    %cst_15 = arith.constant dense<0.000000e+00> : vector<16x32xf32>
    %22 = tpu.matmul %19, %21, %cst_15 {dimension_numbers = #tpu.dot_dimension_numbers<[1], [0], [0], [1], [0, 0, 1, 1], [], []>} : vector<16x64xf32>, vector<64x32xf32>, vector<16x32xf32> -> vector<16x32xf32>
    %c0_16 = arith.constant 0 : index
    %c0_17 = arith.constant 0 : index
    %c0_18 = arith.constant 0 : index
    %23 = vector.load %arg6[%c0_16, %c0_17, %c0_18] : memref<1x1x32xf32, #tpu.memory_space<vmem>>, vector<1x1x32xf32>
    %24 = vector.shape_cast %23 : vector<1x1x32xf32> to vector<1x32xf32>
    %25 = vector.broadcast %24 : vector<1x32xf32> to vector<16x32xf32>
    %26 = arith.addf %22, %25 : vector<16x32xf32>
    %27 = arith.addf %4, %26 : vector<16x32xf32>
    %28 = vector.shape_cast %27 : vector<16x32xf32> to vector<2x8x32xf32>
    %29 = arith.mulf %28, %28 : vector<2x8x32xf32>
    %cst_19 = arith.constant dense<0.000000e+00> : vector<2x8xf32>
    %30 = vector.multi_reduction <add>, %29, %cst_19 [2] : vector<2x8x32xf32> to vector<2x8xf32>
    %31 = vector.shape_cast %30 : vector<2x8xf32> to vector<2x8x1xf32>
    %cst_20 = arith.constant 3.200000e+01 : f32
    %32 = vector.broadcast %cst_20 : f32 to vector<2x8x1xf32>
    %33 = arith.divf %31, %32 : vector<2x8x1xf32>
    %cst_21 = arith.constant 9.99999993E-9 : f32
    %34 = vector.broadcast %cst_21 : f32 to vector<2x8x1xf32>
    %35 = arith.addf %33, %34 : vector<2x8x1xf32>
    %36 = math.rsqrt %35 : vector<2x8x1xf32>
    %37 = vector.broadcast %36 : vector<2x8x1xf32> to vector<2x8x32xf32>
    %38 = arith.mulf %28, %37 : vector<2x8x32xf32>
    %c0_22 = arith.constant 0 : index
    %c0_23 = arith.constant 0 : index
    %c0_24 = arith.constant 0 : index
    %39 = vector.load %arg7[%c0_22, %c0_23, %c0_24] : memref<1x8x32xf32, #tpu.memory_space<vmem>>, vector<1x8x32xf32>
    %40 = vector.shape_cast %39 : vector<1x8x32xf32> to vector<8x32xf32>
    %41 = vector.shape_cast %40 : vector<8x32xf32> to vector<1x8x32xf32>
    %42 = vector.broadcast %41 : vector<1x8x32xf32> to vector<2x8x32xf32>
    %43 = arith.mulf %38, %42 : vector<2x8x32xf32>
    %c0_25 = arith.constant 0 : index
    %c0_26 = arith.constant 0 : index
    %44 = vector.load %arg2[%c0_25, %c0_26] : memref<8x8xf32, #tpu.memory_space<vmem>>, vector<8x8xf32>
    %c0_27 = arith.constant 0 : index
    %c0_28 = arith.constant 0 : index
    %c0_29 = arith.constant 0 : index
    %45 = vector.load %arg8[%c0_27, %c0_28, %c0_29] : memref<1x32x96xf32, #tpu.memory_space<vmem>>, vector<1x32x96xf32>
    %46 = vector.shape_cast %45 : vector<1x32x96xf32> to vector<32x96xf32>
    %c0_30 = arith.constant 0 : index
    %c0_31 = arith.constant 0 : index
    %c0_32 = arith.constant 0 : index
    %47 = vector.load %arg9[%c0_30, %c0_31, %c0_32] : memref<1x32x32xf32, #tpu.memory_space<vmem>>, vector<1x32x32xf32>
    %48 = vector.shape_cast %47 : vector<1x32x32xf32> to vector<32x32xf32>
    %49 = vector.shape_cast %43 : vector<2x8x32xf32> to vector<16x32xf32>
    %50 = vector.extract_strided_slice %46 {offsets = [0, 0], sizes = [32, 24], strides = [1, 1]} : vector<32x96xf32> to vector<32x24xf32>
    %cst_33 = arith.constant dense<0.000000e+00> : vector<16x24xf32>
    %51 = tpu.matmul %49, %50, %cst_33 {dimension_numbers = #tpu.dot_dimension_numbers<[1], [0], [0], [1], [0, 0, 1, 1], [], []>} : vector<16x32xf32>, vector<32x24xf32>, vector<16x24xf32> -> vector<16x24xf32>
    %52 = vector.extract_strided_slice %51 {offsets = [0, 0], sizes = [16, 8], strides = [1, 1]} : vector<16x24xf32> to vector<16x8xf32>
    %53 = vector.shape_cast %52 : vector<16x8xf32> to vector<2x8x8xf32>
    %54 = vector.extract_strided_slice %51 {offsets = [0, 8], sizes = [16, 8], strides = [1, 1]} : vector<16x24xf32> to vector<16x8xf32>
    %55 = vector.shape_cast %54 : vector<16x8xf32> to vector<2x8x8xf32>
    %56 = vector.extract_strided_slice %51 {offsets = [0, 16], sizes = [16, 8], strides = [1, 1]} : vector<16x24xf32> to vector<16x8xf32>
    %57 = vector.extract_strided_slice %48 {offsets = [0, 0], sizes = [8, 32], strides = [1, 1]} : vector<32x32xf32> to vector<8x32xf32>
    %cst_34 = arith.constant dense<0.000000e+00> : vector<16x32xf32>
    %58 = tpu.matmul %56, %57, %cst_34 {dimension_numbers = #tpu.dot_dimension_numbers<[1], [0], [0], [1], [0, 0, 1, 1], [], []>} : vector<16x8xf32>, vector<8x32xf32>, vector<16x32xf32> -> vector<16x32xf32>
    %59 = vector.shape_cast %58 : vector<16x32xf32> to vector<2x8x32xf32>
    %cst_35 = arith.constant dense<0.000000e+00> : vector<2x8x8xf32>
    %60 = tpu.matmul %53, %55, %cst_35 {dimension_numbers = #tpu.dot_dimension_numbers<[2], [2], [1], [1], [0, 0, 0, 1, 1, 1], [0], [0]>} : vector<2x8x8xf32>, vector<2x8x8xf32>, vector<2x8x8xf32> -> vector<2x8x8xf32>
    %cst_36 = arith.constant 0.353553385 : f32
    %61 = vector.broadcast %cst_36 : f32 to vector<2x8x8xf32>
    %62 = arith.mulf %60, %61 : vector<2x8x8xf32>
    %63 = vector.shape_cast %44 : vector<8x8xf32> to vector<1x8x8xf32>
    %64 = vector.broadcast %63 : vector<1x8x8xf32> to vector<2x8x8xf32>
    %65 = arith.addf %62, %64 : vector<2x8x8xf32>
    %cst_37 = arith.constant dense<0xFF800000> : vector<2x8xf32>
    %66 = vector.multi_reduction <maximumf>, %65, %cst_37 [2] : vector<2x8x8xf32> to vector<2x8xf32>
    %67 = vector.shape_cast %66 : vector<2x8xf32> to vector<2x8x1xf32>
    %68 = vector.broadcast %67 : vector<2x8x1xf32> to vector<2x8x8xf32>
    %69 = arith.subf %65, %68 : vector<2x8x8xf32>
    %70 = math.exp %69 : vector<2x8x8xf32>
    %cst_38 = arith.constant dense<0.000000e+00> : vector<2x8xf32>
    %71 = vector.multi_reduction <add>, %70, %cst_38 [2] : vector<2x8x8xf32> to vector<2x8xf32>
    %72 = vector.shape_cast %71 : vector<2x8xf32> to vector<2x8x1xf32>
    %73 = tpu.reciprocal %72 {approx = true} : vector<2x8x1xf32> -> vector<2x8x1xf32>
    %74 = vector.broadcast %73 : vector<2x8x1xf32> to vector<2x8x8xf32>
    %75 = arith.mulf %70, %74 : vector<2x8x8xf32>
    %cst_39 = arith.constant dense<0.000000e+00> : vector<2x8x32xf32>
    %76 = tpu.matmul %75, %59, %cst_39 {dimension_numbers = #tpu.dot_dimension_numbers<[2], [1], [1], [2], [0, 0, 0, 1, 1, 2], [0], [0]>} : vector<2x8x8xf32>, vector<2x8x32xf32>, vector<2x8x32xf32> -> vector<2x8x32xf32>
    %77 = arith.addf %43, %76 : vector<2x8x32xf32>
    %78 = vector.shape_cast %77 : vector<2x8x32xf32> to vector<16x32xf32>
    %79 = vector.extract_strided_slice %46 {offsets = [0, 24], sizes = [32, 24], strides = [1, 1]} : vector<32x96xf32> to vector<32x24xf32>
    %cst_40 = arith.constant dense<0.000000e+00> : vector<16x24xf32>
    %80 = tpu.matmul %78, %79, %cst_40 {dimension_numbers = #tpu.dot_dimension_numbers<[1], [0], [0], [1], [0, 0, 1, 1], [], []>} : vector<16x32xf32>, vector<32x24xf32>, vector<16x24xf32> -> vector<16x24xf32>
    %81 = vector.extract_strided_slice %80 {offsets = [0, 0], sizes = [16, 8], strides = [1, 1]} : vector<16x24xf32> to vector<16x8xf32>
    %82 = vector.shape_cast %81 : vector<16x8xf32> to vector<2x8x8xf32>
    %83 = vector.extract_strided_slice %80 {offsets = [0, 8], sizes = [16, 8], strides = [1, 1]} : vector<16x24xf32> to vector<16x8xf32>
    %84 = vector.shape_cast %83 : vector<16x8xf32> to vector<2x8x8xf32>
    %85 = vector.extract_strided_slice %80 {offsets = [0, 16], sizes = [16, 8], strides = [1, 1]} : vector<16x24xf32> to vector<16x8xf32>
    %86 = vector.extract_strided_slice %48 {offsets = [8, 0], sizes = [8, 32], strides = [1, 1]} : vector<32x32xf32> to vector<8x32xf32>
    %cst_41 = arith.constant dense<0.000000e+00> : vector<16x32xf32>
    %87 = tpu.matmul %85, %86, %cst_41 {dimension_numbers = #tpu.dot_dimension_numbers<[1], [0], [0], [1], [0, 0, 1, 1], [], []>} : vector<16x8xf32>, vector<8x32xf32>, vector<16x32xf32> -> vector<16x32xf32>
    %88 = vector.shape_cast %87 : vector<16x32xf32> to vector<2x8x32xf32>
    %cst_42 = arith.constant dense<0.000000e+00> : vector<2x8x8xf32>
    %89 = tpu.matmul %82, %84, %cst_42 {dimension_numbers = #tpu.dot_dimension_numbers<[2], [2], [1], [1], [0, 0, 0, 1, 1, 1], [0], [0]>} : vector<2x8x8xf32>, vector<2x8x8xf32>, vector<2x8x8xf32> -> vector<2x8x8xf32>
    %cst_43 = arith.constant 0.353553385 : f32
    %90 = vector.broadcast %cst_43 : f32 to vector<2x8x8xf32>
    %91 = arith.mulf %89, %90 : vector<2x8x8xf32>
    %92 = vector.shape_cast %44 : vector<8x8xf32> to vector<1x8x8xf32>
    %93 = vector.broadcast %92 : vector<1x8x8xf32> to vector<2x8x8xf32>
    %94 = arith.addf %91, %93 : vector<2x8x8xf32>
    %cst_44 = arith.constant dense<0xFF800000> : vector<2x8xf32>
    %95 = vector.multi_reduction <maximumf>, %94, %cst_44 [2] : vector<2x8x8xf32> to vector<2x8xf32>
    %96 = vector.shape_cast %95 : vector<2x8xf32> to vector<2x8x1xf32>
    %97 = vector.broadcast %96 : vector<2x8x1xf32> to vector<2x8x8xf32>
    %98 = arith.subf %94, %97 : vector<2x8x8xf32>
    %99 = math.exp %98 : vector<2x8x8xf32>
    %cst_45 = arith.constant dense<0.000000e+00> : vector<2x8xf32>
    %100 = vector.multi_reduction <add>, %99, %cst_45 [2] : vector<2x8x8xf32> to vector<2x8xf32>
    %101 = vector.shape_cast %100 : vector<2x8xf32> to vector<2x8x1xf32>
    %102 = tpu.reciprocal %101 {approx = true} : vector<2x8x1xf32> -> vector<2x8x1xf32>
    %103 = vector.broadcast %102 : vector<2x8x1xf32> to vector<2x8x8xf32>
    %104 = arith.mulf %99, %103 : vector<2x8x8xf32>
    %cst_46 = arith.constant dense<0.000000e+00> : vector<2x8x32xf32>
    %105 = tpu.matmul %104, %88, %cst_46 {dimension_numbers = #tpu.dot_dimension_numbers<[2], [1], [1], [2], [0, 0, 0, 1, 1, 2], [0], [0]>} : vector<2x8x8xf32>, vector<2x8x32xf32>, vector<2x8x32xf32> -> vector<2x8x32xf32>
    %106 = arith.addf %77, %105 : vector<2x8x32xf32>
    %107 = vector.shape_cast %106 : vector<2x8x32xf32> to vector<16x32xf32>
    %108 = vector.extract_strided_slice %46 {offsets = [0, 48], sizes = [32, 24], strides = [1, 1]} : vector<32x96xf32> to vector<32x24xf32>
    %cst_47 = arith.constant dense<0.000000e+00> : vector<16x24xf32>
    %109 = tpu.matmul %107, %108, %cst_47 {dimension_numbers = #tpu.dot_dimension_numbers<[1], [0], [0], [1], [0, 0, 1, 1], [], []>} : vector<16x32xf32>, vector<32x24xf32>, vector<16x24xf32> -> vector<16x24xf32>
    %110 = vector.extract_strided_slice %109 {offsets = [0, 0], sizes = [16, 8], strides = [1, 1]} : vector<16x24xf32> to vector<16x8xf32>
    %111 = vector.shape_cast %110 : vector<16x8xf32> to vector<2x8x8xf32>
    %112 = vector.extract_strided_slice %109 {offsets = [0, 8], sizes = [16, 8], strides = [1, 1]} : vector<16x24xf32> to vector<16x8xf32>
    %113 = vector.shape_cast %112 : vector<16x8xf32> to vector<2x8x8xf32>
    %114 = vector.extract_strided_slice %109 {offsets = [0, 16], sizes = [16, 8], strides = [1, 1]} : vector<16x24xf32> to vector<16x8xf32>
    %115 = vector.extract_strided_slice %48 {offsets = [16, 0], sizes = [8, 32], strides = [1, 1]} : vector<32x32xf32> to vector<8x32xf32>
    %cst_48 = arith.constant dense<0.000000e+00> : vector<16x32xf32>
    %116 = tpu.matmul %114, %115, %cst_48 {dimension_numbers = #tpu.dot_dimension_numbers<[1], [0], [0], [1], [0, 0, 1, 1], [], []>} : vector<16x8xf32>, vector<8x32xf32>, vector<16x32xf32> -> vector<16x32xf32>
    %117 = vector.shape_cast %116 : vector<16x32xf32> to vector<2x8x32xf32>
    %cst_49 = arith.constant dense<0.000000e+00> : vector<2x8x8xf32>
    %118 = tpu.matmul %111, %113, %cst_49 {dimension_numbers = #tpu.dot_dimension_numbers<[2], [2], [1], [1], [0, 0, 0, 1, 1, 1], [0], [0]>} : vector<2x8x8xf32>, vector<2x8x8xf32>, vector<2x8x8xf32> -> vector<2x8x8xf32>
    %cst_50 = arith.constant 0.353553385 : f32
    %119 = vector.broadcast %cst_50 : f32 to vector<2x8x8xf32>
    %120 = arith.mulf %118, %119 : vector<2x8x8xf32>
    %121 = vector.shape_cast %44 : vector<8x8xf32> to vector<1x8x8xf32>
    %122 = vector.broadcast %121 : vector<1x8x8xf32> to vector<2x8x8xf32>
    %123 = arith.addf %120, %122 : vector<2x8x8xf32>
    %cst_51 = arith.constant dense<0xFF800000> : vector<2x8xf32>
    %124 = vector.multi_reduction <maximumf>, %123, %cst_51 [2] : vector<2x8x8xf32> to vector<2x8xf32>
    %125 = vector.shape_cast %124 : vector<2x8xf32> to vector<2x8x1xf32>
    %126 = vector.broadcast %125 : vector<2x8x1xf32> to vector<2x8x8xf32>
    %127 = arith.subf %123, %126 : vector<2x8x8xf32>
    %128 = math.exp %127 : vector<2x8x8xf32>
    %cst_52 = arith.constant dense<0.000000e+00> : vector<2x8xf32>
    %129 = vector.multi_reduction <add>, %128, %cst_52 [2] : vector<2x8x8xf32> to vector<2x8xf32>
    %130 = vector.shape_cast %129 : vector<2x8xf32> to vector<2x8x1xf32>
    %131 = tpu.reciprocal %130 {approx = true} : vector<2x8x1xf32> -> vector<2x8x1xf32>
    %132 = vector.broadcast %131 : vector<2x8x1xf32> to vector<2x8x8xf32>
    %133 = arith.mulf %128, %132 : vector<2x8x8xf32>
    %cst_53 = arith.constant dense<0.000000e+00> : vector<2x8x32xf32>
    %134 = tpu.matmul %133, %117, %cst_53 {dimension_numbers = #tpu.dot_dimension_numbers<[2], [1], [1], [2], [0, 0, 0, 1, 1, 2], [0], [0]>} : vector<2x8x8xf32>, vector<2x8x32xf32>, vector<2x8x32xf32> -> vector<2x8x32xf32>
    %135 = arith.addf %106, %134 : vector<2x8x32xf32>
    %136 = vector.shape_cast %135 : vector<2x8x32xf32> to vector<16x32xf32>
    %137 = vector.extract_strided_slice %46 {offsets = [0, 72], sizes = [32, 24], strides = [1, 1]} : vector<32x96xf32> to vector<32x24xf32>
    %cst_54 = arith.constant dense<0.000000e+00> : vector<16x24xf32>
    %138 = tpu.matmul %136, %137, %cst_54 {dimension_numbers = #tpu.dot_dimension_numbers<[1], [0], [0], [1], [0, 0, 1, 1], [], []>} : vector<16x32xf32>, vector<32x24xf32>, vector<16x24xf32> -> vector<16x24xf32>
    %139 = vector.extract_strided_slice %138 {offsets = [0, 0], sizes = [16, 8], strides = [1, 1]} : vector<16x24xf32> to vector<16x8xf32>
    %140 = vector.shape_cast %139 : vector<16x8xf32> to vector<2x8x8xf32>
    %141 = vector.extract_strided_slice %138 {offsets = [0, 8], sizes = [16, 8], strides = [1, 1]} : vector<16x24xf32> to vector<16x8xf32>
    %142 = vector.shape_cast %141 : vector<16x8xf32> to vector<2x8x8xf32>
    %143 = vector.extract_strided_slice %138 {offsets = [0, 16], sizes = [16, 8], strides = [1, 1]} : vector<16x24xf32> to vector<16x8xf32>
    %144 = vector.extract_strided_slice %48 {offsets = [24, 0], sizes = [8, 32], strides = [1, 1]} : vector<32x32xf32> to vector<8x32xf32>
    %cst_55 = arith.constant dense<0.000000e+00> : vector<16x32xf32>
    %145 = tpu.matmul %143, %144, %cst_55 {dimension_numbers = #tpu.dot_dimension_numbers<[1], [0], [0], [1], [0, 0, 1, 1], [], []>} : vector<16x8xf32>, vector<8x32xf32>, vector<16x32xf32> -> vector<16x32xf32>
    %146 = vector.shape_cast %145 : vector<16x32xf32> to vector<2x8x32xf32>
    %cst_56 = arith.constant dense<0.000000e+00> : vector<2x8x8xf32>
    %147 = tpu.matmul %140, %142, %cst_56 {dimension_numbers = #tpu.dot_dimension_numbers<[2], [2], [1], [1], [0, 0, 0, 1, 1, 1], [0], [0]>} : vector<2x8x8xf32>, vector<2x8x8xf32>, vector<2x8x8xf32> -> vector<2x8x8xf32>
    %cst_57 = arith.constant 0.353553385 : f32
    %148 = vector.broadcast %cst_57 : f32 to vector<2x8x8xf32>
    %149 = arith.mulf %147, %148 : vector<2x8x8xf32>
    %150 = vector.shape_cast %44 : vector<8x8xf32> to vector<1x8x8xf32>
    %151 = vector.broadcast %150 : vector<1x8x8xf32> to vector<2x8x8xf32>
    %152 = arith.addf %149, %151 : vector<2x8x8xf32>
    %cst_58 = arith.constant dense<0xFF800000> : vector<2x8xf32>
    %153 = vector.multi_reduction <maximumf>, %152, %cst_58 [2] : vector<2x8x8xf32> to vector<2x8xf32>
    %154 = vector.shape_cast %153 : vector<2x8xf32> to vector<2x8x1xf32>
    %155 = vector.broadcast %154 : vector<2x8x1xf32> to vector<2x8x8xf32>
    %156 = arith.subf %152, %155 : vector<2x8x8xf32>
    %157 = math.exp %156 : vector<2x8x8xf32>
    %cst_59 = arith.constant dense<0.000000e+00> : vector<2x8xf32>
    %158 = vector.multi_reduction <add>, %157, %cst_59 [2] : vector<2x8x8xf32> to vector<2x8xf32>
    %159 = vector.shape_cast %158 : vector<2x8xf32> to vector<2x8x1xf32>
    %160 = tpu.reciprocal %159 {approx = true} : vector<2x8x1xf32> -> vector<2x8x1xf32>
    %161 = vector.broadcast %160 : vector<2x8x1xf32> to vector<2x8x8xf32>
    %162 = arith.mulf %157, %161 : vector<2x8x8xf32>
    %cst_60 = arith.constant dense<0.000000e+00> : vector<2x8x32xf32>
    %163 = tpu.matmul %162, %146, %cst_60 {dimension_numbers = #tpu.dot_dimension_numbers<[2], [1], [1], [2], [0, 0, 0, 1, 1, 2], [0], [0]>} : vector<2x8x8xf32>, vector<2x8x32xf32>, vector<2x8x32xf32> -> vector<2x8x32xf32>
    %164 = arith.addf %135, %163 : vector<2x8x32xf32>
    %165 = arith.addf %43, %164 : vector<2x8x32xf32>
    %166 = arith.mulf %165, %165 : vector<2x8x32xf32>
    %cst_61 = arith.constant dense<0.000000e+00> : vector<2x8xf32>
    %167 = vector.multi_reduction <add>, %166, %cst_61 [2] : vector<2x8x32xf32> to vector<2x8xf32>
    %168 = vector.shape_cast %167 : vector<2x8xf32> to vector<2x8x1xf32>
    %cst_62 = arith.constant 3.200000e+01 : f32
    %169 = vector.broadcast %cst_62 : f32 to vector<2x8x1xf32>
    %170 = arith.divf %168, %169 : vector<2x8x1xf32>
    %cst_63 = arith.constant 9.99999993E-9 : f32
    %171 = vector.broadcast %cst_63 : f32 to vector<2x8x1xf32>
    %172 = arith.addf %170, %171 : vector<2x8x1xf32>
    %173 = math.rsqrt %172 : vector<2x8x1xf32>
    %174 = vector.broadcast %173 : vector<2x8x1xf32> to vector<2x8x32xf32>
    %175 = arith.mulf %165, %174 : vector<2x8x32xf32>
    %c0_64 = arith.constant 0 : index
    %c0_65 = arith.constant 0 : index
    %c0_66 = arith.constant 0 : index
    %176 = vector.load %arg10[%c0_64, %c0_65, %c0_66] : memref<1x8x32xf32, #tpu.memory_space<vmem>>, vector<1x8x32xf32>
    %177 = vector.shape_cast %176 : vector<1x8x32xf32> to vector<8x32xf32>
    %178 = vector.shape_cast %177 : vector<8x32xf32> to vector<1x8x32xf32>
    %179 = vector.broadcast %178 : vector<1x8x32xf32> to vector<2x8x32xf32>
    %180 = arith.mulf %175, %179 : vector<2x8x32xf32>
    %c0_67 = arith.constant 0 : index
    %c0_68 = arith.constant 0 : index
    %c0_69 = arith.constant 0 : index
    %181 = vector.load %arg14[%c0_67, %c0_68, %c0_69] : memref<2x8x32xf32, #tpu.memory_space<vmem>>, vector<2x8x32xf32>
    tpu.vector_store %arg14[%c0_67, %c0_68, %c0_69], %180 {strides = array<i32>} : memref<2x8x32xf32, #tpu.memory_space<vmem>>, vector<2x8x32xf32>,
    %c1_i32 = arith.constant 1 : i32
    %182 = arith.cmpi eq, %arg0, %c1_i32 : i32
    %183 = arith.extui %182 : i1 to i32
    %c0_i32_70 = arith.constant 0 : i32
    %184 = arith.cmpi ne, %183, %c0_i32_70 : i32
    scf.if %184 {
      %c0_71 = arith.constant 0 : index
      %c0_72 = arith.constant 0 : index
      %c0_73 = arith.constant 0 : index
      %185 = vector.load %arg11[%c0_71, %c0_72, %c0_73] : memref<8x32x16xf32, #tpu.memory_space<vmem>>, vector<8x32x16xf32>
      %cst_74 = arith.constant 0.000000e+00 : f32
      %186 = vector.broadcast %cst_74 : f32 to vector<2x16xf32>
      %187 = vector.extract_strided_slice %180 {offsets = [0, 0, 0], sizes = [2, 1, 32], strides = [1, 1, 1]} : vector<2x8x32xf32> to vector<2x1x32xf32>
      %188 = vector.shape_cast %187 : vector<2x1x32xf32> to vector<2x32xf32>
      %189 = vector.extract_strided_slice %185 {offsets = [0, 0, 0], sizes = [1, 32, 16], strides = [1, 1, 1]} : vector<8x32x16xf32> to vector<1x32x16xf32>
      %190 = vector.shape_cast %189 : vector<1x32x16xf32> to vector<32x16xf32>
      %cst_75 = arith.constant dense<0.000000e+00> : vector<2x16xf32>
      %191 = tpu.matmul %188, %190, %cst_75 {dimension_numbers = #tpu.dot_dimension_numbers<[1], [0], [0], [1], [0, 0, 1, 1], [], []>} : vector<2x32xf32>, vector<32x16xf32>, vector<2x16xf32> -> vector<2x16xf32>
      %192 = arith.addf %186, %191 : vector<2x16xf32>
      %193 = vector.extract_strided_slice %180 {offsets = [0, 1, 0], sizes = [2, 1, 32], strides = [1, 1, 1]} : vector<2x8x32xf32> to vector<2x1x32xf32>
      %194 = vector.shape_cast %193 : vector<2x1x32xf32> to vector<2x32xf32>
      %195 = vector.extract_strided_slice %185 {offsets = [1, 0, 0], sizes = [1, 32, 16], strides = [1, 1, 1]} : vector<8x32x16xf32> to vector<1x32x16xf32>
      %196 = vector.shape_cast %195 : vector<1x32x16xf32> to vector<32x16xf32>
      %cst_76 = arith.constant dense<0.000000e+00> : vector<2x16xf32>
      %197 = tpu.matmul %194, %196, %cst_76 {dimension_numbers = #tpu.dot_dimension_numbers<[1], [0], [0], [1], [0, 0, 1, 1], [], []>} : vector<2x32xf32>, vector<32x16xf32>, vector<2x16xf32> -> vector<2x16xf32>
      %198 = arith.addf %192, %197 : vector<2x16xf32>
      %199 = vector.extract_strided_slice %180 {offsets = [0, 2, 0], sizes = [2, 1, 32], strides = [1, 1, 1]} : vector<2x8x32xf32> to vector<2x1x32xf32>
      %200 = vector.shape_cast %199 : vector<2x1x32xf32> to vector<2x32xf32>
      %201 = vector.extract_strided_slice %185 {offsets = [2, 0, 0], sizes = [1, 32, 16], strides = [1, 1, 1]} : vector<8x32x16xf32> to vector<1x32x16xf32>
      %202 = vector.shape_cast %201 : vector<1x32x16xf32> to vector<32x16xf32>
      %cst_77 = arith.constant dense<0.000000e+00> : vector<2x16xf32>
      %203 = tpu.matmul %200, %202, %cst_77 {dimension_numbers = #tpu.dot_dimension_numbers<[1], [0], [0], [1], [0, 0, 1, 1], [], []>} : vector<2x32xf32>, vector<32x16xf32>, vector<2x16xf32> -> vector<2x16xf32>
      %204 = arith.addf %198, %203 : vector<2x16xf32>
      %205 = vector.extract_strided_slice %180 {offsets = [0, 3, 0], sizes = [2, 1, 32], strides = [1, 1, 1]} : vector<2x8x32xf32> to vector<2x1x32xf32>
      %206 = vector.shape_cast %205 : vector<2x1x32xf32> to vector<2x32xf32>
      %207 = vector.extract_strided_slice %185 {offsets = [3, 0, 0], sizes = [1, 32, 16], strides = [1, 1, 1]} : vector<8x32x16xf32> to vector<1x32x16xf32>
      %208 = vector.shape_cast %207 : vector<1x32x16xf32> to vector<32x16xf32>
      %cst_78 = arith.constant dense<0.000000e+00> : vector<2x16xf32>
      %209 = tpu.matmul %206, %208, %cst_78 {dimension_numbers = #tpu.dot_dimension_numbers<[1], [0], [0], [1], [0, 0, 1, 1], [], []>} : vector<2x32xf32>, vector<32x16xf32>, vector<2x16xf32> -> vector<2x16xf32>
      %210 = arith.addf %204, %209 : vector<2x16xf32>
      %211 = vector.extract_strided_slice %180 {offsets = [0, 4, 0], sizes = [2, 1, 32], strides = [1, 1, 1]} : vector<2x8x32xf32> to vector<2x1x32xf32>
      %212 = vector.shape_cast %211 : vector<2x1x32xf32> to vector<2x32xf32>
      %213 = vector.extract_strided_slice %185 {offsets = [4, 0, 0], sizes = [1, 32, 16], strides = [1, 1, 1]} : vector<8x32x16xf32> to vector<1x32x16xf32>
      %214 = vector.shape_cast %213 : vector<1x32x16xf32> to vector<32x16xf32>
      %cst_79 = arith.constant dense<0.000000e+00> : vector<2x16xf32>
      %215 = tpu.matmul %212, %214, %cst_79 {dimension_numbers = #tpu.dot_dimension_numbers<[1], [0], [0], [1], [0, 0, 1, 1], [], []>} : vector<2x32xf32>, vector<32x16xf32>, vector<2x16xf32> -> vector<2x16xf32>
      %216 = arith.addf %210, %215 : vector<2x16xf32>
      %217 = vector.extract_strided_slice %180 {offsets = [0, 5, 0], sizes = [2, 1, 32], strides = [1, 1, 1]} : vector<2x8x32xf32> to vector<2x1x32xf32>
      %218 = vector.shape_cast %217 : vector<2x1x32xf32> to vector<2x32xf32>
      %219 = vector.extract_strided_slice %185 {offsets = [5, 0, 0], sizes = [1, 32, 16], strides = [1, 1, 1]} : vector<8x32x16xf32> to vector<1x32x16xf32>
      %220 = vector.shape_cast %219 : vector<1x32x16xf32> to vector<32x16xf32>
      %cst_80 = arith.constant dense<0.000000e+00> : vector<2x16xf32>
      %221 = tpu.matmul %218, %220, %cst_80 {dimension_numbers = #tpu.dot_dimension_numbers<[1], [0], [0], [1], [0, 0, 1, 1], [], []>} : vector<2x32xf32>, vector<32x16xf32>, vector<2x16xf32> -> vector<2x16xf32>
      %222 = arith.addf %216, %221 : vector<2x16xf32>
      %223 = vector.extract_strided_slice %180 {offsets = [0, 6, 0], sizes = [2, 1, 32], strides = [1, 1, 1]} : vector<2x8x32xf32> to vector<2x1x32xf32>
      %224 = vector.shape_cast %223 : vector<2x1x32xf32> to vector<2x32xf32>
      %225 = vector.extract_strided_slice %185 {offsets = [6, 0, 0], sizes = [1, 32, 16], strides = [1, 1, 1]} : vector<8x32x16xf32> to vector<1x32x16xf32>
      %226 = vector.shape_cast %225 : vector<1x32x16xf32> to vector<32x16xf32>
      %cst_81 = arith.constant dense<0.000000e+00> : vector<2x16xf32>
      %227 = tpu.matmul %224, %226, %cst_81 {dimension_numbers = #tpu.dot_dimension_numbers<[1], [0], [0], [1], [0, 0, 1, 1], [], []>} : vector<2x32xf32>, vector<32x16xf32>, vector<2x16xf32> -> vector<2x16xf32>
      %228 = arith.addf %222, %227 : vector<2x16xf32>
      %229 = vector.extract_strided_slice %180 {offsets = [0, 7, 0], sizes = [2, 1, 32], strides = [1, 1, 1]} : vector<2x8x32xf32> to vector<2x1x32xf32>
      %230 = vector.shape_cast %229 : vector<2x1x32xf32> to vector<2x32xf32>
      %231 = vector.extract_strided_slice %185 {offsets = [7, 0, 0], sizes = [1, 32, 16], strides = [1, 1, 1]} : vector<8x32x16xf32> to vector<1x32x16xf32>
      %232 = vector.shape_cast %231 : vector<1x32x16xf32> to vector<32x16xf32>
      %cst_82 = arith.constant dense<0.000000e+00> : vector<2x16xf32>
      %233 = tpu.matmul %230, %232, %cst_82 {dimension_numbers = #tpu.dot_dimension_numbers<[1], [0], [0], [1], [0, 0, 1, 1], [], []>} : vector<2x32xf32>, vector<32x16xf32>, vector<2x16xf32> -> vector<2x16xf32>
      %234 = arith.addf %228, %233 : vector<2x16xf32>
      %c0_83 = arith.constant 0 : index
      %c0_84 = arith.constant 0 : index
      %235 = vector.load %arg12[%c0_83, %c0_84] : memref<1x16xf32, #tpu.memory_space<vmem>>, vector<1x16xf32>
      %236 = vector.broadcast %235 : vector<1x16xf32> to vector<2x16xf32>
      %237 = arith.addf %234, %236 : vector<2x16xf32>
      %c0_85 = arith.constant 0 : index
      %c0_86 = arith.constant 0 : index
      %238 = vector.load %arg13[%c0_85, %c0_86] : memref<2x16xf32, #tpu.memory_space<vmem>>, vector<2x16xf32>
      tpu.vector_store %arg13[%c0_85, %c0_86], %237 {strides = array<i32>} : memref<2x16xf32, #tpu.memory_space<vmem>>, vector<2x16xf32>,
    } else {
    }
    return
  }
  func.func @transform_0(%arg0: i32) -> (i32, i32, i32) {
    %c0_i32 = arith.constant 0 : i32
    %c0_i32_0 = arith.constant 0 : i32
    %c0_i32_1 = arith.constant 0 : i32
    %c0_i32_2 = arith.constant 0 : i32
    return %c0_i32, %c0_i32_0, %c0_i32_1 : i32, i32, i32
  }
  func.func @transform_1(%arg0: i32) -> (i32, i32) {
    %c0_i32 = arith.constant 0 : i32
    %c0_i32_0 = arith.constant 0 : i32
    %c0_i32_1 = arith.constant 0 : i32
    return %c0_i32, %c0_i32_0 : i32, i32
  }
  func.func @transform_2(%arg0: i32) -> (i32, i32, i32) {
    %c0_i32 = arith.constant 0 : i32
    %c0_i32_0 = arith.constant 0 : i32
    %c0_i32_1 = arith.constant 0 : i32
    return %arg0, %c0_i32, %c0_i32_0 : i32, i32, i32
  }
  func.func @transform_3(%arg0: i32) -> (i32, i32, i32) {
    %c0_i32 = arith.constant 0 : i32
    %c0_i32_0 = arith.constant 0 : i32
    %c0_i32_1 = arith.constant 0 : i32
    return %arg0, %c0_i32, %c0_i32_0 : i32, i32, i32
  }
  func.func @transform_4(%arg0: i32) -> (i32, i32, i32) {
    %c0_i32 = arith.constant 0 : i32
    %c0_i32_0 = arith.constant 0 : i32
    %c0_i32_1 = arith.constant 0 : i32
    return %arg0, %c0_i32, %c0_i32_0 : i32, i32, i32
  }
  func.func @transform_5(%arg0: i32) -> (i32, i32, i32) {
    %c0_i32 = arith.constant 0 : i32
    %c0_i32_0 = arith.constant 0 : i32
    %c0_i32_1 = arith.constant 0 : i32
    return %arg0, %c0_i32, %c0_i32_0 : i32, i32, i32
  }
  func.func @transform_6(%arg0: i32) -> (i32, i32, i32) {
    %c0_i32 = arith.constant 0 : i32
    %c0_i32_0 = arith.constant 0 : i32
    %c0_i32_1 = arith.constant 0 : i32
    return %arg0, %c0_i32, %c0_i32_0 : i32, i32, i32
  }
  func.func @transform_7(%arg0: i32) -> (i32, i32, i32) {
    %c0_i32 = arith.constant 0 : i32
    %c0_i32_0 = arith.constant 0 : i32
    %c0_i32_1 = arith.constant 0 : i32
    return %arg0, %c0_i32, %c0_i32_0 : i32, i32, i32
  }
  func.func @transform_8(%arg0: i32) -> (i32, i32, i32) {
    %c0_i32 = arith.constant 0 : i32
    %c0_i32_0 = arith.constant 0 : i32
    %c0_i32_1 = arith.constant 0 : i32
    return %arg0, %c0_i32, %c0_i32_0 : i32, i32, i32
  }
  func.func @transform_9(%arg0: i32) -> (i32, i32, i32) {
    %c0_i32 = arith.constant 0 : i32
    %c0_i32_0 = arith.constant 0 : i32
    %c0_i32_1 = arith.constant 0 : i32
    return %arg0, %c0_i32, %c0_i32_0 : i32, i32, i32
  }
  func.func @transform_10(%arg0: i32) -> (i32, i32, i32) {
    %c0_i32 = arith.constant 0 : i32
    %c0_i32_0 = arith.constant 0 : i32
    %c0_i32_1 = arith.constant 0 : i32
    %c0_i32_2 = arith.constant 0 : i32
    return %c0_i32, %c0_i32_0, %c0_i32_1 : i32, i32, i32
  }
  func.func @transform_11(%arg0: i32) -> (i32, i32) {
    %c0_i32 = arith.constant 0 : i32
    %c0_i32_0 = arith.constant 0 : i32
    %c0_i32_1 = arith.constant 0 : i32
    return %c0_i32, %c0_i32_0 : i32, i32
  }
  func.func @transform_12(%arg0: i32) -> (i32, i32) {
    %c0_i32 = arith.constant 0 : i32
    %c0_i32_0 = arith.constant 0 : i32
    %c0_i32_1 = arith.constant 0 : i32
    return %c0_i32, %c0_i32_0 : i32, i32
  }
}

</mosaic_0001>

<bundles_post_ra>
// kernel: _lambda_.1
= control target key start
LH: loop header
LB: loop body
LE: loop exit
PB: predicated region body
PF: predicated region fallthrough
CT: control target
= control target key end

     0   :  { %s4840_s0 = inlined_call_operand.vmem [shape: f32[2,8,32], index: 0, kind: input, shape index: {}]   ;;  %s4841_s1 = inlined_call_operand.vmem [shape: f32[8,8], index: 1, kind: input, shape index: {}]   ;;  %s4842_s2 = inlined_call_operand.vmem [shape: f32[2,32,64], index: 2, kind: input, shape index: {}]   ;;  %s4843_s3 = inlined_call_operand.vmem [shape: f32[2,1,64], index: 3, kind: input, shape index: {}]   ;;  %s4844_s4 = inlined_call_operand.vmem [shape: f32[2,64,32], index: 4, kind: input, shape index: {}]   ;;  %s4845_s5 = inlined_call_operand.vmem [shape: f32[2,1,32], index: 5, kind: input, shape index: {}]   ;;  %s4846_s6 = inlined_call_operand.vmem [shape: f32[2,8,32], index: 6, kind: input, shape index: {}]   ;;  %s4847_s7 = inlined_call_operand.vmem [shape: f32[2,32,96], index: 7, kind: input, shape index: {}]   ;;  %s4848_s8 = inlined_call_operand.vmem [shape: f32[2,32,32], index: 8, kind: input, shape index: {}]   ;;  %s4849_s9 = inlined_call_operand.vmem [shape: f32[2,8,32], index: 9, kind: input, shape index: {}]   ;;  %s4850_s10 = inlined_call_operand.vmem [shape: f32[8,32,16], index: 10, kind: input, shape index: {}]   ;;  %s4851_s11 = inlined_call_operand.vmem [shape: f32[1,16], index: 11, kind: input, shape index: {}]   ;;  %s4852_s12 = inlined_call_operand.hbm [shape: f32[2,16], index: 12, kind: output, shape index: {}]  }
   0x1   :  { %4855 = sst [smem:[#allocation7_spill]] %s4842_s2 }
   0x2   :  { %4856 = sst [smem:[#allocation8_spill]] %s4852_s12 }
   0x3   :  { %17 = vsyncpa [#allocation4], 0  ;;  %s4355_s21 = smov 0  }
   0x4 LB: > { %4857 = sst [smem:[#allocation6_spill]] %s4277_s21  ;;  %s4361_s22 = sadd.s32 4294967295, %s4277_s21   ;;  %s4277_s21 = sphi %s4355_s21, %s23_s21  }
   0x5   : > { %p3576_p0 = scmp.ge.s32.totalorder %s4277_s21, 1  ;;  %p422_p1 = scmp.lt.s32.totalorder %s4277_s21, 3 }
   0x7   : > { %p423_p2 = pnand %p3576_p0, %p422_p1 }
   0x8   : > { %p488_p3 = scmp.lt.s32.totalorder (!%p423_p2), %s4361_s22, 1  ;;  %s4858_s2 = sld [smem:[#allocation7_spill]] (!%p423_p2) }
   0x9   : > { %426 = sbr.rel (%p423_p2) target bundleno = 5420 (0x152c), region = 68  ;;  %p3587_p4 = scmp.ne.s32.totalorder (!%p423_p2), %s4361_s22, 0 }
  0x10   : > { %s4367_s23 = scalar_select %p488_p3, %s4361_s22, 1 }
  0x11   : > { %525 = sbr.rel (%p3587_p4) target bundleno = 24 (0x18), region = 72  ;;  %v526_v0 = vld [vmem:[%s4840_s0] sm:$0xff] (!%p3587_p4)  ;;  %vm528_vm0 = vcmask (!%p3587_p4), 261120   ;;  %v527_v1 = vld [vmem:[%s4840_s0 + $0x8] sm:$0xff] (!%p3587_p4) }
  0x12   : > { %s3648_s24 = sshll.u32 %s4367_s23, 5  ;;  %s3649_s13 = sshll.u32 %s4367_s23, 6  ;;  %529 = vst.msk [vmem:[#allocation2] sm:$0xff] (!%p3587_p4), %vm528_vm0, %v526_v0  ;;  %530 = vst.msk [vmem:[#allocation2 + $0x8] sm:$0xff] (!%p3587_p4), %vm528_vm0, %v527_v1 }
  0x13   : > { %s492_s30 = scalar_lea.vmem %s4858_s2, %s3648_s24  ;;  %s4381_s16 = scalar_lea.vmem %s4844_s4, %s3649_s13 }
  0x14   : > { %s503_s19 = scalar_lea.vmem %s4845_s5, %s4367_s23  ;;  %s3581_s20 = sshll.u32 %s4367_s23, 3 }
  0x15   : > { %s4391_s25 = scalar_lea.vmem %s4847_s7, %s3648_s24  ;;  %s4396_s28 = scalar_lea.vmem %s4846_s6, %s3581_s20 }
  0x16   : > { %s4401_s13 = scalar_lea.vmem %s4848_s8, %s3648_s24  ;;  %s4406_s17 = scalar_lea.vmem %s4849_s9, %s3581_s20 }
  0x18 PF: > { %v533_v2 = vld [vmem:[%s492_s30] sm:$0xff]  ;;  %v534_v3 = vld [vmem:[%s492_s30 + $0x8] sm:$0xff]  ;;  %v535_v4 = vld [vmem:[%s492_s30 + $0x10] sm:$0xff]  ;;  %vm544_vm1 = vcmask 261120   ;;  %vm651_vm2 = vcmask 523264   ;;  %vm4280_vm3 = vmmov 0  }
  0x19   : > { %v4038_v5 = vpack.c.bf16 %v534_v3, %v533_v2  ;;  %v536_v6 = vld [vmem:[%s492_s30 + $0x18] sm:$0xff]  ;;  %v531_v7 = vld [vmem:[#allocation2] sm:$0xff]  ;;  %v532_v9 = vld [vmem:[#allocation2 + $0x8] sm:$0xff]  ;;  %s4859_s30 = scalar_lea.vmem %s4843_s3, %s4367_s23  ;;  %s4281_s23 = smov 112   ;;  %vm851_vm4 = vcmask 64512  }
  0x1a   : > { %v4042_v8 = vpack.c.bf16 %v536_v6, %v535_v4  ;;  %3784 = vmatprep.mubr.msk.f32.mxu0 %vm544_vm1, %v531_v7  ;;  %v636_v10 = vld [vmem:[%s4381_s16] sm:$0xff]  ;;  %v637_v11 = vld [vmem:[%s4381_s16 + $0x8] sm:$0xff]  ;;  %v638_v13 = vld [vmem:[%s4381_s16 + $0x10] sm:$0xff]  ;;  %v4279_v4 = vmov 0.0   ;;  %s4284_s29 = smov 80   ;;  %s4285_s14 = smov 56  }
  0x1b   : > { %4039 = vmatprep.subr.bf16.mxu0 %v4038_v5  ;;  %v4046_v12 = vpack.c.bf16 %v637_v11, %v636_v10  ;;  %v639_v14 = vld [vmem:[%s4381_s16 + $0x18] sm:$0xff]  ;;  %v640_v16 = vld [vmem:[%s4381_s16 + $0x20] sm:$0xff]  ;;  %v641_v17 = vld [vmem:[%s4381_s16 + $0x28] sm:$0xff]  ;;  %p3634_p5 = scmp.ne.s32.totalorder %s4361_s22, 1 }
  0x1c   : > { %4041 = vmatpush3.bf16.msra.mxu0 %v4038_v5  ;;  %v4050_v15 = vpack.c.bf16 %v639_v14, %v638_v13  ;;  %v4054_v18 = vpack.c.bf16 %v641_v17, %v640_v16  ;;  %v642_v19 = vld [vmem:[%s4381_s16 + $0x30] sm:$0xff]  ;;  %v643_v20 = vld [vmem:[%s4381_s16 + $0x38] sm:$0xff]  ;;  %v3588_v22 = vld [vmem:[%s4859_s30] ss:$0 sm:$0xff]  ;;  %vm4287_vm5 = vmmov (!%p3634_p5), 0   ;;  %vm2835_vm6 = vcmask (!%p3634_p5), 1041409  }
  0x1d   : > { %4043 = vmatprep.subr.bf16.mxu0 %v4042_v8  ;;  %4047 = vmatprep.subr.bf16.mxu1 %v4046_v12  ;;  %v4058_v21 = vpack.c.bf16 %v643_v20, %v642_v19  ;;  %v3591_v37 = vld [vmem:[%s503_s19] ss:$0 sm:$0xff]  ;;  %v4441_v49 = vld [vmem:[%s4391_s25 + $0x8] sm:$0xff]  ;;  %v4444_v50 = vld [vmem:[%s4391_s25 + $0x10] sm:$0xff]  ;;  %s4282_s19 = smov 120   ;;  %vm3447_vm7 = vcmask (!%p3634_p5), 123904  }
  0x1e   : > { %4049 = vmatpush3.bf16.msra.mxu1 %v4046_v12  ;;  %v4438_v48 = vld [vmem:[%s4391_s25] sm:$0xff]  ;;  %v4449_v52 = vld [vmem:[%s4391_s25 + $0x18] sm:$0xff] }
  0x1f   : > { %4051 = vmatprep.subr.bf16.mxu1 %v4050_v15  ;;  %v4062_v51 = vpack.c.bf16 %v4441_v49, %v4438_v48  ;;  %v4066_v53 = vpack.c.bf16 %v4449_v52, %v4444_v50  ;;  %v752_v61 = vld [vmem:[%s4396_s28] sm:$0xff]  ;;  %s4283_s28 = smov 104  }
  0x20   : > { %4045 = vmatpush3.bf16.msra.mxu0 %v4042_v8  ;;  %v760_v3 = vld [vmem:[%s4401_s13] sm:$0xff] }
  0x21   : > { %4063 = vmatprep.subr.bf16.mxu0 %v4062_v51  ;;  %v4488_v12 = vld [vmem:[%s4841_s1] sm:$0xff] }
  0x22   : > { %4053 = vmatpush3.bf16.msra.mxu1 %v4050_v15 }
  0x23   : > { %3785 = vmatmul.mubr.msk.f32.vlgmr.msra.gmra.mrb[0].mxu0 %vm544_vm1, %v532_v9  ;;  %4055 = vmatprep.subr.bf16.mxu1 %v4054_v18 }
  0x24   : > { %4065 = vmatpush3.bf16.msra.mxu0 %v4062_v51 }
  0x25   : > { %4067 = vmatprep.subr.bf16.mxu0 %v4066_v53 }
  0x26   : > { %4057 = vmatpush3.bf16.msra.mxu1 %v4054_v18 }
  0x27   : > { %4059 = vmatprep.subr.bf16.mxu1 %v4058_v21 }
  0x28   : > { %4069 = vmatpush3.bf16.msra.mxu0 %v4066_v53 }
  0x29   : > { %3817 = vmatprep.subr.mxu0 %v760_v3 }
  0x2a   : > { %4061 = vmatpush3.bf16.msra.mxu1 %v4058_v21 }
  0x2b   : > { %3822 = vmatprep.subr.mxu1 %v4279_v4 }
  0xf6   : > { %v3786_v23 = vpop.f32.mrb[0].mxu0 }
  0xf7   : > { %v623_v24 = vadd.f32 %v3786_v23, %v3588_v22  ;;  %v617_v25 = vpop.f32.mrb[1].mxu0 }
  0xf8   : > { %v618_v26 = vadd.f32 %v3588_v22, %v617_v25 }
  0xf9   : > { %v629_v27 = vmul.f32 0.70710677, %v623_v24  ;;  %v627_v34 = vmul.f32 0.5, %v623_v24 }
  0xfa   : > { %v628_v28 = vmul.f32 0.70710677, %v618_v26  ;;  %v626_v32 = vmul.f32 0.5, %v618_v26 }
  0xfb   : > { %4197 = verf.f32 %v629_v27 }
  0xfc   : > { %4199 = verf.f32 %v628_v28 }
 0x105   : > { %v4198_v29 = vpop.eup %4197 }
 0x106   : > { %v4200_v30 = vpop.eup %4199  ;;  %v633_v31 = vadd.f32 1.0, %v4198_v29 }
 0x107   : > { %v632_v33 = vadd.f32 1.0, %v4200_v30 }
 0x108   : > { %v635_v36 = vmul.f32 %v633_v31, %v627_v34  ;;  %v4498_v34 = vpack.i.bf16 %v4441_v49, %v4438_v48 }
 0x109   : > { %v634_v35 = vmul.f32 %v632_v33, %v626_v32 }
 0x10b   : > { %3803 = vmatprep.mubr.msk.f32.mxu1 %vm651_vm2, %v634_v35  ;;  %v4502_v35 = vpack.i.bf16 %v4449_v52, %v4444_v50 }
 0x10c   : > { %3804 = vmatmul.mubr.msk.f32.vlgmr.msra.gmra.mrb[0].mxu1 %vm651_vm2, %v635_v36 }
 0x10d   : > { %3824 = vmatprep.mubr.msk.f32.mxu1 %vm4280_vm3, %v4279_v4 }
 0x1df   : > { %v3805_v38 = vpop.f32.mrb[0].mxu1 }
 0x1e0   : > { %v730_v39 = vadd.f32 %v3805_v38, %v3591_v37  ;;  %v724_v40 = vpop.f32.mrb[1].mxu1 }
 0x1e1   : > { %v725_v41 = vadd.f32 %v3591_v37, %v724_v40 }
 0x1e2   : > { %v734_v42 = vadd.f32 %v730_v39, %v532_v9 }
 0x1e3   : > { %v733_v43 = vadd.f32 %v725_v41, %v531_v7 }
 0x1e4   : > { %v736_v46 = vmul.f32 %v734_v42, %v734_v42 }
 0x1e5   : > { %v735_v44 = vmul.f32 %v733_v43, %v733_v43 }
 0x1e6   : > { %v740_v47 = vsel %vm544_vm1, %v736_v46, 0.0 }
 0x1e7   : > { %v737_v45 = vsel %vm544_vm1, %v735_v44, 0.0 }
 0x1e8   : > { %738 = vadd.xlane.f32.xlu0 %v737_v45 }
 0x1ec   : > { %741 = vadd.xlane.f32.xlu0 %v740_v47 }
 0x275   : > { %v739_v54 = vpop.xlane.xlu0 %738 }
 0x276   : > { %v744_v55 = vmul.f32 0.03125, %v739_v54 }
 0x278   : > { %v746_v56 = vadd.f32 1e-08, %v744_v55 }
 0x279   : > { %v742_v57 = vpop.xlane.xlu0 %741 }
 0x27a   : > { %4201 = vrsqrt.f32 %v746_v56  ;;  %v745_v58 = vmul.f32 0.03125, %v742_v57  ;;  %v761_v56 = vld [vmem:[%s4401_s13 + $0x8] sm:$0xff] }
 0x27c   : > { %v747_v59 = vadd.f32 1e-08, %v745_v58 }
 0x27e   : > { %4203 = vrsqrt.f32 %v747_v59 }
 0x284   : > { %v4202_v60 = vpop.eup %4201 }
 0x285   : > { %v750_v62 = vmul.f32 %v4202_v60, %v733_v43 }
 0x287   : > { %v4454_v63 = vmul.f32 %v752_v61, %v750_v62 }
 0x288   : > { %v4204_v0 = vpop.eup %4203 }
 0x289   : > { %v751_v1 = vmul.f32 %v4204_v0, %v734_v42  ;;  %3814 = vmatprep.mubr.msk.f32.mxu0 %vm544_vm1, %v4454_v63 }
 0x28b   : > { %v4458_v2 = vmul.f32 %v752_v61, %v751_v1 }
 0x28d   : > { %3815 = vmatmul.mubr.msk.f32.vlgmr.msra.gmra.mrb[2].mxu0 %vm544_vm1, %v4458_v2 }
 0x28e   : > { %3818 = vmatpush3.msra.mxu0 %v760_v3 }
 0x28f   : > { %3827 = vmatprep.subr.mxu0 %v4279_v4 }
 0x360   : > { %v3816_v5 = vpop.f32.mrb[2].mxu0 }
 0x361   : > { %849 = vrot.lane.b32.xlu1 %v3816_v5, %s4281_s23  ;;  %v836_v6 = vpop.f32.mrb[3].mxu0 }
 0x362   : > { %931 = vrot.lane.b32.xlu0 %v836_v6, %s4282_s19 }
 0x365   : > { %847 = vrot.lane.b32.xlu1 %v836_v6, %s4281_s23 }
 0x369   : > { %1007 = vrot.lane.b32.xlu1 %v3816_v5, %s4282_s19 }
 0x3d3   : > { %v850_v7 = vpop.permute.xlu1 %849 }
 0x3d4   : > { %v932_v8 = vpop.permute.xlu0 %931 }
 0x3d5   : > { %3823 = vmatpush3.xpose.msk.msra.mxu1 %vm851_vm4, %v932_v8 }
 0x3d6   : > { %3832 = vmatprep.subr.mxu1 %v4279_v4 }
 0x3d7   : > { %v848_v9 = vpop.permute.xlu1 %847 }
 0x3d8   : > { %3819 = vmatprep.mubr.msk.f32.mxu0 %vm851_vm4, %v848_v9  ;;  %3825 = vmatmul.mubr.msk.f32.vlgmr.msra.gmra.mrb[2].mxu1 %vm851_vm4, %v836_v6 }
 0x3d9   : > { %3820 = vmatmul.mubr.msk.f32.vlgmr.msra.gmra.mrb[4].mxu0 %vm851_vm4, %v850_v7  ;;  %3834 = vmatprep.mubr.msk.f32.mxu1 %vm4280_vm3, %v4279_v4 }
 0x3da   : > { %3829 = vmatprep.mubr.msk.f32.mxu0 %vm4280_vm3, %v4279_v4 }
 0x3db   : > { %v1008_v10 = vpop.permute.xlu1 %1007 }
 0x3dc   : > { %3828 = vmatpush3.xpose.msk.msra.mxu0 %vm851_vm4, %v1008_v10 }
 0x3dd   : > { %3837 = vmatprep.subr.mxu0 %v4279_v4 }
 0x3df   : > { %3830 = vmatmul.mubr.msk.f32.vlgmr.msra.gmra.mrb[6].mxu0 %vm851_vm4, %v3816_v5 }
 0x3e0   : > { %3839 = vmatprep.mubr.msk.f32.mxu0 %vm4280_vm3, %v4279_v4 }
 0x4ab   : > { %v1003_v11 = vpop.f32.mrb[2].mxu1 }
 0x4ac   : > { %v1083_v13 = vmul.f32 0.35355338, %v1003_v11  ;;  %v3821_v14 = vpop.f32.mrb[4].mxu0  ;;  %v3826_v15 = vpop.f32.mrb[3].mxu1 }
 0x4ad   : > { %v922_v16 = vpop.f32.mrb[5].mxu0  ;;  %3838 = vmatpush3.msra.mxu0 %v3821_v14 }
 0x4ae   : > { %3833 = vmatpush3.msra.mxu1 %v922_v16  ;;  %v1085_v17 = vadd.f32 %v1083_v13, %v4488_v12  ;;  %3853 = vmatprep.subr.mxu0 %v761_v56 }
 0x4b0   : > { %v1087_v18 = vsel %vm851_vm4, %v1085_v17, -inf }
 0x4b1   : > { %1088 = vmax.xlane.f32.xlu1 %v1087_v18 }
 0x4b2   : > { %v1079_v19 = vpop.f32.mrb[6].mxu0 }
 0x4b3   : > { %v1084_v20 = vmul.f32 0.35355338, %v1079_v19  ;;  %v3831_v21 = vpop.f32.mrb[7].mxu0 }
 0x4b5   : > { %v1086_v22 = vadd.f32 %v1084_v20, %v4488_v12 }
 0x4b7   : > { %v1090_v23 = vsel %vm851_vm4, %v1086_v22, -inf }
 0x4b8   : > { %1091 = vmax.xlane.f32.xlu0 %v1090_v23 }
 0x4ce   : > { %4173 = vrot.lane.b32.xlu0 %v4502_v35, %s4283_s28 }
 0x53e   : > { %v1089_v24 = vpop.xlane.xlu1 %1088 }
 0x53f   : > { %v1093_v25 = vsub.f32 %v1085_v17, %v1089_v24 }
 0x541   : > { %v1095_v26 = vmul.f32 1.442695, %v1093_v25 }
 0x543   : > { %4205 = vpow2.f32 %v1095_v26 }
 0x545   : > { %v1092_v27 = vpop.xlane.xlu0 %1091 }
 0x546   : > { %v1094_v28 = vsub.f32 %v1086_v22, %v1092_v27 }
 0x548   : > { %v1097_v29 = vmul.f32 1.442695, %v1094_v28 }
 0x549   : > { %v4174_v38 = vpop.permute.xlu0 %4173 }
 0x54a   : > { %4207 = vpow2.f32 %v1097_v29  ;;  %v4176_v39 = vunpack.i.h.bf16 %v4174_v38  ;;  %v4175_v40 = vunpack.i.l.bf16 %v4174_v38 }
 0x54c   : > { %v4074_v47 = vpack.c.bf16 %v4176_v39, %v4175_v40 }
 0x54d   : > { %v4206_v30 = vpop.eup %4205 }
 0x54e   : > { %v1099_v31 = vsel %vm851_vm4, %v4206_v30, 0.0 }
 0x54f   : > { %1100 = vadd.xlane.f32.xlu1 %v1099_v31 }
 0x554   : > { %v4208_v32 = vpop.eup %4207 }
 0x555   : > { %v1102_v33 = vsel %vm851_vm4, %v4208_v32, 0.0 }
 0x556   : > { %1103 = vadd.xlane.f32.xlu1 %v1102_v33 }
 0x567   : > { %4168 = vrot.lane.b32.xlu1 %v4498_v34, %s4283_s28 }
 0x5dc   : > { %v1101_v36 = vpop.xlane.xlu1 %1100 }
 0x5dd   : > { %4209 = vrcp.f32 %v1101_v36 }
 0x5e3   : > { %v1104_v37 = vpop.xlane.xlu1 %1103 }
 0x5e4   : > { %4211 = vrcp.f32 %v1104_v37 }
 0x5e7   : > { %v4210_v41 = vpop.eup %4209  ;;  %v4169_v42 = vpop.permute.xlu1 %4168 }
 0x5e8   : > { %v1107_v43 = vmul.f32 %v4210_v41, %v4206_v30  ;;  %v4171_v44 = vunpack.i.h.bf16 %v4169_v42  ;;  %v4170_v45 = vunpack.i.l.bf16 %v4169_v42 }
 0x5ea   : > { %3835 = vmatmul.mubr.msk.f32.vlgmr.msra.gmra.mrb[4].mxu1 %vm851_vm4, %v1107_v43  ;;  %v4070_v46 = vpack.c.bf16 %v4171_v44, %v4170_v45 }
 0x5ec   : > { %4071 = vmatprep.subr.bf16.mxu1 %v4070_v46 }
 0x5ed   : > { %4073 = vmatpush3.bf16.msra.mxu1 %v4070_v46 }
 0x5ee   : > { %v4212_v48 = vpop.eup %4211  ;;  %4075 = vmatprep.subr.bf16.mxu1 %v4074_v47 }
 0x5ef   : > { %v1108_v49 = vmul.f32 %v4212_v48, %v4208_v32 }
 0x5f1   : > { %3840 = vmatmul.mubr.msk.f32.vlgmr.msra.gmra.mrb[8].mxu0 %vm851_vm4, %v1108_v49  ;;  %4077 = vmatpush3.bf16.msra.mxu1 %v4074_v47  ;;  %v762_v47 = vld [vmem:[%s4401_s13 + $0x10] sm:$0xff] }
 0x5f2   : > { %3863 = vmatprep.subr.mxu1 %v4279_v4  ;;  %3854 = vmatpush3.msra.mxu0 %v761_v56 }
 0x5f3   : > { %3858 = vmatprep.subr.mxu0 %v4279_v4 }
 0x6bd   : > { %v1178_v50 = vpop.f32.mrb[4].mxu1 }
 0x6be   : > { %v4510_v51 = vadd.f32 %v1178_v50, %v4454_v63  ;;  %v3836_v52 = vpop.f32.mrb[5].mxu1 }
 0x6c0   : > { %3850 = vmatprep.mubr.msk.f32.mxu1 %vm544_vm1, %v4510_v51 }
 0x6c4   : > { %v1251_v53 = vpop.f32.mrb[8].mxu0 }
 0x6c5   : > { %v4515_v54 = vadd.f32 %v1251_v53, %v4458_v2  ;;  %v3841_v55 = vpop.f32.mrb[9].mxu0 }
 0x6c7   : > { %3851 = vmatmul.mubr.msk.f32.vlgmr.msra.gmra.mrb[6].mxu1 %vm544_vm1, %v4515_v54 }
 0x6c8   : > { %3865 = vmatprep.mubr.msk.f32.mxu1 %vm4280_vm3, %v4279_v4 }
 0x79a   : > { %v3852_v57 = vpop.f32.mrb[6].mxu1 }
 0x79b   : > { %1515 = vrot.lane.b32.xlu0 %v3852_v57, %s4282_s19  ;;  %1358 = vrot.lane.b32.xlu1 %v3852_v57, %s4281_s23  ;;  %v1345_v58 = vpop.f32.mrb[7].mxu1 }
 0x79f   : > { %1356 = vrot.lane.b32.xlu1 %v1345_v58, %s4281_s23 }
 0x7a3   : > { %1439 = vrot.lane.b32.xlu1 %v1345_v58, %s4282_s19 }
 0x80d   : > { %v1516_v59 = vpop.permute.xlu0 %1515  ;;  %v1359_v60 = vpop.permute.xlu1 %1358 }
 0x80e   : > { %3864 = vmatpush3.xpose.msk.msra.mxu1 %vm851_vm4, %v1516_v59 }
 0x80f   : > { %3873 = vmatprep.subr.mxu1 %v4279_v4 }
 0x811   : > { %3866 = vmatmul.mubr.msk.f32.vlgmr.msra.gmra.mrb[8].mxu1 %vm851_vm4, %v3852_v57  ;;  %v1357_v61 = vpop.permute.xlu1 %1356 }
 0x812   : > { %3855 = vmatprep.mubr.msk.f32.mxu0 %vm851_vm4, %v1357_v61  ;;  %3875 = vmatprep.mubr.msk.f32.mxu1 %vm4280_vm3, %v4279_v4 }
 0x813   : > { %3856 = vmatmul.mubr.msk.f32.vlgmr.msra.gmra.mrb[10].mxu0 %vm851_vm4, %v1359_v60 }
 0x814   : > { %3860 = vmatprep.mubr.msk.f32.mxu0 %vm4280_vm3, %v4279_v4 }
 0x815   : > { %v1440_v62 = vpop.permute.xlu1 %1439 }
 0x816   : > { %3859 = vmatpush3.xpose.msk.msra.mxu0 %vm851_vm4, %v1440_v62 }
 0x817   : > { %3868 = vmatprep.subr.mxu0 %v4279_v4 }
 0x819   : > { %3861 = vmatmul.mubr.msk.f32.vlgmr.msra.gmra.mrb[12].mxu0 %vm851_vm4, %v1345_v58 }
 0x81a   : > { %3870 = vmatprep.mubr.msk.f32.mxu0 %vm4280_vm3, %v4279_v4 }
 0x8e4   : > { %v1587_v0 = vpop.f32.mrb[8].mxu1 }
 0x8e5   : > { %v1592_v1 = vmul.f32 0.35355338, %v1587_v0  ;;  %v3867_v3 = vpop.f32.mrb[9].mxu1 }
 0x8e6   : > { %v3857_v5 = vpop.f32.mrb[10].mxu0 }
 0x8e7   : > { %v1430_v6 = vpop.f32.mrb[11].mxu0  ;;  %3874 = vmatpush3.msra.mxu1 %v3857_v5  ;;  %v1594_v7 = vadd.f32 %v1592_v1, %v4488_v12 }
 0x8e8   : > { %3869 = vmatpush3.msra.mxu0 %v1430_v6  ;;  %3889 = vmatprep.subr.mxu1 %v762_v47 }
 0x8e9   : > { %v1598_v8 = vsel %vm851_vm4, %v1594_v7, -inf }
 0x8ea   : > { %1599 = vmax.xlane.f32.xlu0 %v1598_v8 }
 0x8ec   : > { %v1511_v9 = vpop.f32.mrb[12].mxu0 }
 0x8ed   : > { %v1591_v10 = vmul.f32 0.35355338, %v1511_v9  ;;  %v3862_v11 = vpop.f32.mrb[13].mxu0 }
 0x8ef   : > { %v1593_v13 = vadd.f32 %v1591_v10, %v4488_v12 }
 0x8f1   : > { %v1595_v14 = vsel %vm851_vm4, %v1593_v13, -inf }
 0x8f2   : > { %1596 = vmax.xlane.f32.xlu1 %v1595_v14 }
 0x977   : > { %v1600_v15 = vpop.xlane.xlu0 %1599 }
 0x978   : > { %v1602_v16 = vsub.f32 %v1594_v7, %v1600_v15 }
 0x97a   : > { %v1605_v17 = vmul.f32 1.442695, %v1602_v16 }
 0x97c   : > { %4213 = vpow2.f32 %v1605_v17 }
 0x97f   : > { %v1597_v18 = vpop.xlane.xlu1 %1596 }
 0x980   : > { %v1601_v19 = vsub.f32 %v1593_v13, %v1597_v18 }
 0x982   : > { %v1603_v20 = vmul.f32 1.442695, %v1601_v19 }
 0x984   : > { %4215 = vpow2.f32 %v1603_v20 }
 0x986   : > { %v4214_v21 = vpop.eup %4213 }
 0x987   : > { %v1610_v22 = vsel %vm851_vm4, %v4214_v21, 0.0 }
 0x988   : > { %1611 = vadd.xlane.f32.xlu1 %v1610_v22 }
 0x98e   : > { %v4216_v23 = vpop.eup %4215 }
 0x98f   : > { %v1607_v24 = vsel %vm851_vm4, %v4216_v23, 0.0 }
 0x990   : > { %1608 = vadd.xlane.f32.xlu0 %v1607_v24 }
 0x999   : > { %4183 = vrot.lane.b32.xlu1 %v4502_v35, %s4284_s29 }
 0x9a6   : > { %4178 = vrot.lane.b32.xlu0 %v4498_v34, %s4284_s29 }
 0xa15   : > { %v1612_v25 = vpop.xlane.xlu1 %1611 }
 0xa16   : > { %4217 = vrcp.f32 %v1612_v25 }
 0xa19   : > { %v4184_v37 = vpop.permute.xlu1 %4183 }
 0xa1a   : > { %v4186_v38 = vunpack.i.h.bf16 %v4184_v37  ;;  %v4185_v39 = vunpack.i.l.bf16 %v4184_v37 }
 0xa1c   : > { %v4082_v40 = vpack.c.bf16 %v4186_v38, %v4185_v39 }
 0xa1d   : > { %v1609_v26 = vpop.xlane.xlu0 %1608 }
 0xa1e   : > { %4219 = vrcp.f32 %v1609_v26 }
 0xa20   : > { %v4218_v27 = vpop.eup %4217 }
 0xa21   : > { %v1616_v28 = vmul.f32 %v4218_v27, %v4214_v21  ;;  %v4179_v29 = vpop.permute.xlu0 %4178 }
 0xa22   : > { %v4181_v30 = vunpack.i.h.bf16 %v4179_v29  ;;  %v4180_v31 = vunpack.i.l.bf16 %v4179_v29 }
 0xa23   : > { %3876 = vmatmul.mubr.msk.f32.vlgmr.msra.gmra.mrb[10].mxu1 %vm851_vm4, %v1616_v28 }
 0xa24   : > { %v4078_v32 = vpack.c.bf16 %v4181_v30, %v4180_v31  ;;  %3890 = vmatpush3.msra.mxu1 %v762_v47 }
 0xa25   : > { %3894 = vmatprep.subr.mxu1 %v4279_v4 }
 0xa26   : > { %4079 = vmatprep.subr.bf16.mxu0 %v4078_v32 }
 0xa28   : > { %v4220_v33 = vpop.eup %4219 }
 0xa29   : > { %v1615_v36 = vmul.f32 %v4220_v33, %v4216_v23 }
 0xa2b   : > { %3871 = vmatmul.mubr.msk.f32.vlgmr.msra.gmra.mrb[14].mxu0 %vm851_vm4, %v1615_v36  ;;  %v763_v36 = vld [vmem:[%s4401_s13 + $0x18] sm:$0xff] }
 0xa2c   : > { %4081 = vmatpush3.bf16.msra.mxu0 %v4078_v32 }
 0xa2d   : > { %4083 = vmatprep.subr.bf16.mxu0 %v4082_v40 }
 0xa30   : > { %4085 = vmatpush3.bf16.msra.mxu0 %v4082_v40 }
 0xa31   : > { %3899 = vmatprep.subr.mxu0 %v4279_v4 }
 0xaf6   : > { %v1759_v41 = vpop.f32.mrb[10].mxu1 }
 0xaf7   : > { %v3877_v42 = vpop.f32.mrb[11].mxu1  ;;  %v4556_v46 = vadd.f32 %v1759_v41, %v4515_v54 }
 0xafe   : > { %v1686_v43 = vpop.f32.mrb[14].mxu0 }
 0xaff   : > { %v4553_v44 = vadd.f32 %v1686_v43, %v4510_v51  ;;  %v3872_v45 = vpop.f32.mrb[15].mxu0 }
 0xb01   : > { %3886 = vmatprep.mubr.msk.f32.mxu0 %vm544_vm1, %v4553_v44 }
 0xb02   : > { %3887 = vmatmul.mubr.msk.f32.vlgmr.msra.gmra.mrb[16].mxu0 %vm544_vm1, %v4556_v46 }
 0xb03   : > { %3901 = vmatprep.mubr.msk.f32.mxu0 %vm4280_vm3, %v4279_v4 }
 0xbd5   : > { %v3888_v48 = vpop.f32.mrb[16].mxu0 }
 0xbd6   : > { %1862 = vrot.lane.b32.xlu0 %v3888_v48, %s4281_s23  ;;  %v1849_v49 = vpop.f32.mrb[17].mxu0 }
 0xbd7   : > { %1860 = vrot.lane.b32.xlu1 %v1849_v49, %s4281_s23 }
 0xbda   : > { %2019 = vrot.lane.b32.xlu0 %v3888_v48, %s4282_s19 }
 0xbdb   : > { %1943 = vrot.lane.b32.xlu1 %v1849_v49, %s4282_s19 }
 0xc48   : > { %v1863_v50 = vpop.permute.xlu0 %1862 }
 0xc49   : > { %v1861_v51 = vpop.permute.xlu1 %1860 }
 0xc4a   : > { %3891 = vmatprep.mubr.msk.f32.mxu1 %vm851_vm4, %v1861_v51 }
 0xc4b   : > { %3892 = vmatmul.mubr.msk.f32.vlgmr.msra.gmra.mrb[12].mxu1 %vm851_vm4, %v1863_v50 }
 0xc4c   : > { %v2020_v52 = vpop.permute.xlu0 %2019  ;;  %3896 = vmatprep.mubr.msk.f32.mxu1 %vm4280_vm3, %v4279_v4 }
 0xc4d   : > { %3900 = vmatpush3.xpose.msk.msra.mxu0 %vm851_vm4, %v2020_v52  ;;  %v1944_v53 = vpop.permute.xlu1 %1943 }
 0xc4e   : > { %3895 = vmatpush3.xpose.msk.msra.mxu1 %vm851_vm4, %v1944_v53  ;;  %3909 = vmatprep.subr.mxu0 %v4279_v4 }
 0xc4f   : > { %3904 = vmatprep.subr.mxu1 %v4279_v4 }
 0xc50   : > { %3902 = vmatmul.mubr.msk.f32.vlgmr.msra.gmra.mrb[18].mxu0 %vm851_vm4, %v3888_v48 }
 0xc51   : > { %3897 = vmatmul.mubr.msk.f32.vlgmr.msra.gmra.mrb[14].mxu1 %vm851_vm4, %v1849_v49  ;;  %3911 = vmatprep.mubr.msk.f32.mxu0 %vm4280_vm3, %v4279_v4 }
 0xc52   : > { %3906 = vmatprep.mubr.msk.f32.mxu1 %vm4280_vm3, %v4279_v4 }
 0xd1e   : > { %v3893_v54 = vpop.f32.mrb[12].mxu1 }
 0xd1f   : > { %v1934_v55 = vpop.f32.mrb[13].mxu1  ;;  %3910 = vmatpush3.msra.mxu0 %v3893_v54 }
 0xd20   : > { %3905 = vmatpush3.msra.mxu1 %v1934_v55  ;;  %3925 = vmatprep.subr.mxu0 %v763_v36 }
 0xd23   : > { %v2091_v56 = vpop.f32.mrb[18].mxu0 }
 0xd24   : > { %v2096_v57 = vmul.f32 0.35355338, %v2091_v56  ;;  %v2015_v58 = vpop.f32.mrb[14].mxu1  ;;  %v3903_v59 = vpop.f32.mrb[19].mxu0 }
 0xd25   : > { %v2095_v60 = vmul.f32 0.35355338, %v2015_v58  ;;  %v3898_v61 = vpop.f32.mrb[15].mxu1 }
 0xd26   : > { %v2098_v62 = vadd.f32 %v2096_v57, %v4488_v12 }
 0xd27   : > { %v2097_v0 = vadd.f32 %v2095_v60, %v4488_v12 }
 0xd28   : > { %v2102_v1 = vsel %vm851_vm4, %v2098_v62, -inf }
 0xd29   : > { %2103 = vmax.xlane.f32.xlu0 %v2102_v1  ;;  %v2099_v3 = vsel %vm851_vm4, %v2097_v0, -inf }
 0xd2a   : > { %2100 = vmax.xlane.f32.xlu1 %v2099_v3 }
 0xdb6   : > { %v2104_v5 = vpop.xlane.xlu0 %2103 }
 0xdb7   : > { %v2106_v6 = vsub.f32 %v2098_v62, %v2104_v5  ;;  %v2101_v7 = vpop.xlane.xlu1 %2100 }
 0xdb8   : > { %v2105_v8 = vsub.f32 %v2097_v0, %v2101_v7 }
 0xdb9   : > { %v2109_v9 = vmul.f32 1.442695, %v2106_v6 }
 0xdba   : > { %v2107_v10 = vmul.f32 1.442695, %v2105_v8 }
 0xdbb   : > { %4221 = vpow2.f32 %v2109_v9 }
 0xdbc   : > { %4223 = vpow2.f32 %v2107_v10 }
 0xdc5   : > { %v4222_v11 = vpop.eup %4221 }
 0xdc6   : > { %v4224_v13 = vpop.eup %4223  ;;  %v2114_v14 = vsel %vm851_vm4, %v4222_v11, 0.0 }
 0xdc7   : > { %2115 = vadd.xlane.f32.xlu1 %v2114_v14  ;;  %v2111_v15 = vsel %vm851_vm4, %v4224_v13, 0.0 }
 0xdc8   : > { %2112 = vadd.xlane.f32.xlu0 %v2111_v15 }
 0xdd8   : > { %4193 = vrot.lane.b32.xlu1 %v4502_v35, %s4285_s14 }
 0xdde   : > { %4188 = vrot.lane.b32.xlu0 %v4498_v34, %s4285_s14 }
 0xe54   : > { %v2116_v16 = vpop.xlane.xlu1 %2115 }
 0xe55   : > { %4225 = vrcp.f32 %v2116_v16  ;;  %v2113_v17 = vpop.xlane.xlu0 %2112 }
 0xe56   : > { %4227 = vrcp.f32 %v2113_v17 }
 0xe58   : > { %v4194_v21 = vpop.permute.xlu1 %4193 }
 0xe59   : > { %v4189_v18 = vpop.permute.xlu0 %4188  ;;  %v4196_v23 = vunpack.i.h.bf16 %v4194_v21  ;;  %v4195_v24 = vunpack.i.l.bf16 %v4194_v21 }
 0xe5a   : > { %v4191_v19 = vunpack.i.h.bf16 %v4189_v18  ;;  %v4190_v20 = vunpack.i.l.bf16 %v4189_v18 }
 0xe5b   : > { %v4090_v29 = vpack.c.bf16 %v4196_v23, %v4195_v24 }
 0xe5c   : > { %v4086_v22 = vpack.c.bf16 %v4191_v19, %v4190_v20 }
 0xe5e   : > { %4087 = vmatprep.subr.bf16.mxu1 %v4086_v22 }
 0xe5f   : > { %v4226_v25 = vpop.eup %4225 }
 0xe60   : > { %v4228_v26 = vpop.eup %4227  ;;  %v2120_v27 = vmul.f32 %v4226_v25, %v4222_v11 }
 0xe61   : > { %v2119_v28 = vmul.f32 %v4228_v26, %v4224_v13 }
 0xe62   : > { %3912 = vmatmul.mubr.msk.f32.vlgmr.msra.gmra.mrb[20].mxu0 %vm851_vm4, %v2120_v27  ;;  %v2791_v27 = vld [vmem:[%s4406_s17] sm:$0xff] }
 0xe63   : > { %3907 = vmatmul.mubr.msk.f32.vlgmr.msra.gmra.mrb[16].mxu1 %vm851_vm4, %v2119_v28  ;;  %3926 = vmatpush3.msra.mxu0 %v763_v36 }
 0xe64   : > { %4089 = vmatpush3.bf16.msra.mxu1 %v4086_v22  ;;  %3930 = vmatprep.subr.mxu0 %v4279_v4 }
 0xe65   : > { %4091 = vmatprep.subr.bf16.mxu1 %v4090_v29 }
 0xe68   : > { %4093 = vmatpush3.bf16.msra.mxu1 %v4090_v29 }
 0xe69   : > { %3935 = vmatprep.subr.mxu1 %v4279_v4 }
 0xf35   : > { %v2263_v34 = vpop.f32.mrb[20].mxu0 }
 0xf36   : > { %v2190_v35 = vpop.f32.mrb[16].mxu1  ;;  %v3913_v30 = vpop.f32.mrb[21].mxu0  ;;  %v4599_v33 = vadd.f32 %v2263_v34, %v4556_v46 }
 0xf37   : > { %v4596_v31 = vadd.f32 %v2190_v35, %v4553_v44  ;;  %v3908_v32 = vpop.f32.mrb[17].mxu1  ;;  %v2804_v30 = vld [vmem:[%s4850_s10 + $0x20] sm:$0xff] (!%p3634_p5) }
 0xf38   : > { %v2800_v32 = vld [vmem:[%s4850_s10] sm:$0xff] (!%p3634_p5) }
 0xf39   : > { %3922 = vmatprep.mubr.msk.f32.mxu1 %vm544_vm1, %v4596_v31 }
 0xf3a   : > { %3923 = vmatmul.mubr.msk.f32.vlgmr.msra.gmra.mrb[18].mxu1 %vm544_vm1, %v4599_v33 }
 0xf3b   : > { %3937 = vmatprep.mubr.msk.f32.mxu1 %vm4280_vm3, %v4279_v4 }
0x100d   : > { %v3924_v37 = vpop.f32.mrb[18].mxu1 }
0x100e   : > { %2366 = vrot.lane.b32.xlu0 %v3924_v37, %s4281_s23  ;;  %v2353_v38 = vpop.f32.mrb[19].mxu1 }
0x100f   : > { %2364 = vrot.lane.b32.xlu1 %v2353_v38, %s4281_s23 }
0x1012   : > { %2523 = vrot.lane.b32.xlu0 %v3924_v37, %s4282_s19 }
0x1013   : > { %2447 = vrot.lane.b32.xlu1 %v2353_v38, %s4282_s19 }
0x1080   : > { %v2367_v39 = vpop.permute.xlu0 %2366 }
0x1081   : > { %v2365_v40 = vpop.permute.xlu1 %2364 }
0x1082   : > { %3927 = vmatprep.mubr.msk.f32.mxu0 %vm851_vm4, %v2365_v40 }
0x1083   : > { %3928 = vmatmul.mubr.msk.f32.vlgmr.msra.gmra.mrb[22].mxu0 %vm851_vm4, %v2367_v39  ;;  %v2807_v39 = vld [vmem:[%s4850_s10 + $0x38] sm:$0xff] (!%p3634_p5) }
0x1084   : > { %v2524_v41 = vpop.permute.xlu0 %2523  ;;  %3932 = vmatprep.mubr.msk.f32.mxu0 %vm4280_vm3, %v4279_v4 }
0x1085   : > { %3936 = vmatpush3.xpose.msk.msra.mxu1 %vm851_vm4, %v2524_v41  ;;  %v2448_v42 = vpop.permute.xlu1 %2447  ;;  %v2802_v41 = vld [vmem:[%s4850_s10 + $0x10] sm:$0xff] (!%p3634_p5) }
0x1086   : > { %3931 = vmatpush3.xpose.msk.msra.mxu0 %vm851_vm4, %v2448_v42  ;;  %3945 = vmatprep.subr.mxu1 %v4279_v4  ;;  %v2803_v42 = vld [vmem:[%s4850_s10 + $0x18] sm:$0xff] (!%p3634_p5) }
0x1087   : > { %3940 = vmatprep.subr.mxu0 %v4279_v4 }
0x1088   : > { %3938 = vmatmul.mubr.msk.f32.vlgmr.msra.gmra.mrb[20].mxu1 %vm851_vm4, %v3924_v37  ;;  %v2801_v37 = vld [vmem:[%s4850_s10 + $0x8] sm:$0xff] (!%p3634_p5) }
0x1089   : > { %3933 = vmatmul.mubr.msk.f32.vlgmr.msra.gmra.mrb[24].mxu0 %vm851_vm4, %v2353_v38  ;;  %3947 = vmatprep.mubr.msk.f32.mxu1 %vm4280_vm3, %v4279_v4  ;;  %v2806_v38 = vld [vmem:[%s4850_s10 + $0x30] sm:$0xff] (!%p3634_p5)  ;;  %v4101_v40 = vpack.c.bf16 (!%p3634_p5), %v2801_v37, %v2800_v32 }
0x108a   : > { %3942 = vmatprep.mubr.msk.f32.mxu0 %vm4280_vm3, %v4279_v4 }
0x1156   : > { %v3929_v43 = vpop.f32.mrb[22].mxu0 }
0x1157   : > { %v2438_v44 = vpop.f32.mrb[23].mxu0  ;;  %3946 = vmatpush3.msra.mxu1 %v3929_v43  ;;  %v4288_v43 = vmov (!%p3634_p5), 0.0  }
0x1158   : > { %3941 = vmatpush3.msra.mxu0 %v2438_v44  ;;  %v4098_v44 = vpack.c.bf16 (!%p3634_p5), %v2807_v39, %v2806_v38 }
0x115b   : > { %v2595_v45 = vpop.f32.mrb[20].mxu1 }
0x115c   : > { %v2600_v46 = vmul.f32 0.35355338, %v2595_v45  ;;  %v2519_v47 = vpop.f32.mrb[24].mxu0  ;;  %v3939_v48 = vpop.f32.mrb[21].mxu1 }
0x115d   : > { %v2599_v49 = vmul.f32 0.35355338, %v2519_v47  ;;  %v3934_v50 = vpop.f32.mrb[25].mxu0  ;;  %v2808_v48 = vld [vmem:[%s4850_s10 + $0x40] sm:$0xff] (!%p3634_p5) }
0x115e   : > { %v2602_v51 = vadd.f32 %v2600_v46, %v4488_v12  ;;  %v4104_v46 = vpack.c.bf16 (!%p3634_p5), %v2803_v42, %v2802_v41  ;;  %v2812_v50 = vld [vmem:[%s4850_s10 + $0x60] sm:$0xff] (!%p3634_p5) }
0x115f   : > { %v2601_v52 = vadd.f32 %v2599_v49, %v4488_v12  ;;  %v2809_v49 = vld [vmem:[%s4850_s10 + $0x48] sm:$0xff] (!%p3634_p5) }
0x1160   : > { %v2606_v53 = vsel %vm851_vm4, %v2602_v51, -inf }
0x1161   : > { %2607 = vmax.xlane.f32.xlu0 %v2606_v53  ;;  %v2603_v54 = vsel %vm851_vm4, %v2601_v52, -inf  ;;  %v4107_v53 = vpack.c.bf16 (!%p3634_p5), %v2809_v49, %v2808_v48 }
0x1162   : > { %2604 = vmax.xlane.f32.xlu1 %v2603_v54 }
0x11ee   : > { %v2608_v4 = vpop.xlane.xlu0 %2607 }
0x11ef   : > { %v2610_v55 = vsub.f32 %v2602_v51, %v2608_v4  ;;  %v2605_v56 = vpop.xlane.xlu1 %2604  ;;  %v2813_v51 = vld [vmem:[%s4850_s10 + $0x68] sm:$0xff] (!%p3634_p5) }
0x11f0   : > { %v2609_v57 = vsub.f32 %v2601_v52, %v2605_v56  ;;  %v4113_v4 = vpack.c.bf16 (!%p3634_p5), %v2813_v51, %v2812_v50  ;;  %v2811_v56 = vld [vmem:[%s4850_s10 + $0x58] sm:$0xff] (!%p3634_p5) }
0x11f1   : > { %v2613_v58 = vmul.f32 1.442695, %v2610_v55  ;;  %v2810_v55 = vld [vmem:[%s4850_s10 + $0x50] sm:$0xff] (!%p3634_p5) }
0x11f2   : > { %v2611_v59 = vmul.f32 1.442695, %v2609_v57  ;;  %v2814_v57 = vld [vmem:[%s4850_s10 + $0x70] sm:$0xff] (!%p3634_p5) }
0x11f3   : > { %4229 = vpow2.f32 %v2613_v58  ;;  %v2815_v58 = vld [vmem:[%s4850_s10 + $0x78] sm:$0xff] (!%p3634_p5) }
0x11f4   : > { %4231 = vpow2.f32 %v2611_v59  ;;  %v4110_v59 = vpack.c.bf16 (!%p3634_p5), %v2811_v56, %v2810_v55 }
0x11fd   : > { %v4230_v60 = vpop.eup %4229 }
0x11fe   : > { %v4232_v61 = vpop.eup %4231  ;;  %v2618_v62 = vsel %vm851_vm4, %v4230_v60, 0.0 }
0x11ff   : > { %2619 = vadd.xlane.f32.xlu1 %v2618_v62  ;;  %v2615_v12 = vsel %vm851_vm4, %v4232_v61, 0.0  ;;  %v4116_v62 = vpack.c.bf16 (!%p3634_p5), %v2815_v58, %v2814_v57 }
0x1200   : > { %2616 = vadd.xlane.f32.xlu0 %v2615_v12  ;;  %v2816_v12 = vld [vmem:[%s4850_s10 + $0x80] sm:$0xff] (!%p3634_p5) }
0x128c   : > { %v2620_v0 = vpop.xlane.xlu1 %2619 }
0x128d   : > { %4233 = vrcp.f32 %v2620_v0  ;;  %v2617_v1 = vpop.xlane.xlu0 %2616  ;;  %v2817_v0 = vld [vmem:[%s4850_s10 + $0x88] sm:$0xff] (!%p3634_p5) }
0x128e   : > { %4235 = vrcp.f32 %v2617_v1 }
0x1297   : > { %v4234_v3 = vpop.eup %4233 }
0x1298   : > { %v4236_v5 = vpop.eup %4235  ;;  %v2624_v6 = vmul.f32 %v4234_v3, %v4230_v60 }
0x1299   : > { %v2623_v7 = vmul.f32 %v4236_v5, %v4232_v61  ;;  %v2820_v5 = vld [vmem:[%s4850_s10 + $0xa0] sm:$0xff] (!%p3634_p5) }
0x129a   : > { %3948 = vmatmul.mubr.msk.f32.vlgmr.msra.gmra.mrb[22].mxu1 %vm851_vm4, %v2624_v6  ;;  %v2821_v6 = vld [vmem:[%s4850_s10 + $0xa8] sm:$0xff] (!%p3634_p5) }
0x129b   : > { %3943 = vmatmul.mubr.msk.f32.vlgmr.msra.gmra.mrb[26].mxu0 %vm851_vm4, %v2623_v7  ;;  %3969 = vmatprep.mubr.msk.f32.mxu1 (!%p3634_p5), %vm4287_vm5, %v4288_v43 }
0x129c   : > { %3958 = vmatprep.mubr.msk.f32.mxu0 (!%p3634_p5), %vm4287_vm5, %v4288_v43 }
0x136d   : > { %v2767_v8 = vpop.f32.mrb[22].mxu1 }
0x136e   : > { %v2772_v9 = vadd.f32 %v2767_v8, %v4599_v33  ;;  %v2694_v10 = vpop.f32.mrb[26].mxu0  ;;  %v3949_v11 = vpop.f32.mrb[23].mxu1  ;;  %v4286_v33 = vmov (!%p3634_p5), 0.0|0.0   ;;  %v4119_v8 = vpack.c.bf16 (!%p3634_p5), %v2817_v0, %v2816_v12 }
0x136f   : > { %v2771_v13 = vadd.f32 %v2694_v10, %v4596_v31  ;;  %v3944_v14 = vpop.f32.mrb[27].mxu0  ;;  %v2805_v31 = vld [vmem:[%s4850_s10 + $0x28] sm:$0xff] (!%p3634_p5)  ;;  %4094 = vmatprep.subr.bf16.mxu0 (!%p3634_p5), %v4286_v33  ;;  %4100 = vmatprep.subr.bf16.mxu1 (!%p3634_p5), %v4286_v33  ;;  %v4125_v10 = vpack.c.bf16 (!%p3634_p5), %v2821_v6, %v2820_v5  ;;  %v2818_v11 = vld [vmem:[%s4850_s10 + $0x90] sm:$0xff] (!%p3634_p5) }
0x1370   : > { %v2774_v15 = vadd.f32 %v2772_v9, %v4458_v2  ;;  %v4095_v36 = vpack.c.bf16 (!%p3634_p5), %v2805_v31, %v2804_v30  ;;  %4102 = vmatpush3.bf16.msra.mxu1 (!%p3634_p5), %v4101_v40  ;;  %v2822_v14 = vld [vmem:[%s4850_s10 + $0xb0] sm:$0xff] (!%p3634_p5)  ;;  %v2831_v31 = vld [vmem:[%s4850_s10 + $0xf8] sm:$0xff] (!%p3634_p5) }
0x1371   : > { %v2773_v16 = vadd.f32 %v2771_v13, %v4454_v63  ;;  %4103 = vmatprep.subr.bf16.mxu1 (!%p3634_p5), %v4286_v33  ;;  %v2819_v13 = vld [vmem:[%s4850_s10 + $0x98] sm:$0xff] (!%p3634_p5)  ;;  %v2830_v30 = vld [vmem:[%s4850_s10 + $0xf0] sm:$0xff] (!%p3634_p5) }
0x1372   : > { %v2776_v17 = vmul.f32 %v2774_v15, %v2774_v15  ;;  %4096 = vmatpush3.bf16.msra.mxu0 (!%p3634_p5), %v4095_v36  ;;  %v4140_v38 = vpack.c.bf16 (!%p3634_p5), %v2831_v31, %v2830_v30 }
0x1373   : > { %v2775_v18 = vmul.f32 %v2773_v16, %v2773_v16  ;;  %4097 = vmatprep.subr.bf16.mxu0 (!%p3634_p5), %v4286_v33 }
0x1374   : > { %v2780_v19 = vsel %vm544_vm1, %v2776_v17, 0.0  ;;  %4105 = vmatpush3.bf16.msra.mxu1 (!%p3634_p5), %v4104_v46 }
0x1375   : > { %2781 = vadd.xlane.f32.xlu1 %v2780_v19  ;;  %v2777_v20 = vsel %vm544_vm1, %v2775_v18, 0.0  ;;  %4112 = vmatprep.subr.bf16.mxu1 (!%p3634_p5), %v4286_v33 }
0x1376   : > { %2778 = vadd.xlane.f32.xlu0 %v2777_v20  ;;  %4099 = vmatpush3.bf16.msra.mxu0 (!%p3634_p5), %v4098_v44  ;;  %v2824_v20 = vld [vmem:[%s4850_s10 + $0xc0] sm:$0xff] (!%p3634_p5) }
0x1377   : > { %4106 = vmatprep.subr.bf16.mxu0 (!%p3634_p5), %v4286_v33 }
0x1402   : > { %v2782_v21 = vpop.xlane.xlu1 %2781 }
0x1403   : > { %v2784_v22 = vmul.f32 0.03125, %v2782_v21  ;;  %v2779_v23 = vpop.xlane.xlu0 %2778  ;;  %v2825_v21 = vld [vmem:[%s4850_s10 + $0xc8] sm:$0xff] (!%p3634_p5) }
0x1404   : > { %v2783_v24 = vmul.f32 0.03125, %v2779_v23 }
0x1405   : > { %v2786_v25 = vadd.f32 1e-08, %v2784_v22 }
0x1406   : > { %v2785_v26 = vadd.f32 1e-08, %v2783_v24  ;;  %v2828_v24 = vld [vmem:[%s4850_s10 + $0xe0] sm:$0xff] (!%p3634_p5) }
0x1407   : > { %4237 = vrsqrt.f32 %v2786_v25  ;;  %v2829_v25 = vld [vmem:[%s4850_s10 + $0xe8] sm:$0xff] (!%p3634_p5) }
0x1408   : > { %4239 = vrsqrt.f32 %v2785_v26 }
0x1411   : > { %v4238_v2 = vpop.eup %4237  ;;  %2799 = sbr.rel (%p3634_p5) target bundleno = 5389 (0x150d), region = 76 }
0x1412   : > { %v4240_v63 = vpop.eup %4239  ;;  %v2790_v28 = vmul.f32 %v4238_v2, %v2774_v15  ;;  %v2823_v15 = vld [vmem:[%s4850_s10 + $0xb8] sm:$0xff] (!%p3634_p5)  ;;  %v4131_v2 = vpack.c.bf16 (!%p3634_p5), %v2825_v21, %v2824_v20 }
0x1413   : > { %v2789_v29 = vmul.f32 %v4240_v63, %v2773_v16  ;;  %v4122_v16 = vpack.c.bf16 (!%p3634_p5), %v2819_v13, %v2818_v11  ;;  %v4128_v19 = vpack.c.bf16 (!%p3634_p5), %v2823_v15, %v2822_v14  ;;  %v4137_v63 = vpack.c.bf16 (!%p3634_p5), %v2829_v25, %v2828_v24 }
0x1414   : > { %v4642_v34 = vmul.f32 %v2791_v27, %v2790_v28  ;;  %v2826_v28 = vld [vmem:[%s4850_s10 + $0xd0] sm:$0xff] (!%p3634_p5) }
0x1415   : > { %v4644_v35 = vmul.f32 %v2791_v27, %v2789_v29  ;;  %v2827_v29 = vld [vmem:[%s4850_s10 + $0xd8] sm:$0xff] (!%p3634_p5) }
0x1416   : > { %2795 = vst.msk [vmem:[#allocation2 + $0x8] sm:$0xff] %vm544_vm1, %v4642_v34  ;;  %v2909_v47 = vrot.slane (!%p3634_p5), %v4642_v34, 7  ;;  %v2984_v61 = vrot.slane (!%p3634_p5), %v4642_v34, 1  ;;  %v3060_v3 = vrot.slane (!%p3634_p5), %v4642_v34, 2  ;;  %v3136_v18 = vrot.slane (!%p3634_p5), %v4642_v34, 3 }
0x1417   : > { %2794 = vst.msk [vmem:[#allocation2] sm:$0xff] %vm544_vm1, %v4644_v35  ;;  %v2834_v45 = vrot.slane (!%p3634_p5), %v4644_v35, 1  ;;  %v2983_v60 = vrot.slane (!%p3634_p5), %v4644_v35, 2  ;;  %v3059_v1 = vrot.slane (!%p3634_p5), %v4644_v35, 3  ;;  %v3135_v17 = vrot.slane (!%p3634_p5), %v4644_v35, 4 }
0x1418   : > { %v2910_v54 = vsel %vm2835_vm6, %v2909_v47, %v4644_v35  ;;  %v3211_v22 = vrot.slane %v4644_v35, 5  ;;  %v3212_v23 = vrot.slane %v4642_v34, 4  ;;  %v4134_v32 = vpack.c.bf16 %v2827_v29, %v2826_v28 }
0x1419   : > { %v2836_v52 = vsel %vm2835_vm6, %v4642_v34, %v2834_v45  ;;  %3970 = vmatmul.mubr.msk.f32.vlgmr.msra.gmra.mrb[0].mxu1 %vm544_vm1, %v2910_v54  ;;  %v2985_v7 = vsel %vm2835_vm6, %v2984_v61, %v2983_v60  ;;  %v3061_v9 = vsel %vm2835_vm6, %v3060_v3, %v3059_v1  ;;  %v3137_v26 = vsel %vm2835_vm6, %v3136_v18, %v3135_v17  ;;  %v3643_v60 = vld [vmem:[%s4851_s11] ss:$0 sm:$0xff] }
0x141a   : > { %3959 = vmatmul.mubr.msk.f32.vlgmr.msra.gmra.mrb[0].mxu0 %vm544_vm1, %v2836_v52  ;;  %4114 = vmatpush3.bf16.msra.mxu1 %v4113_v4  ;;  %v3213_v27 = vsel %vm2835_vm6, %v3212_v23, %v3211_v22  ;;  %v3287_v36 = vrot.slane %v4644_v35, 6  ;;  %v3288_v37 = vrot.slane %v4642_v34, 5  ;;  %v3363_v39 = vrot.slane %v4644_v35, 7 }
0x141b   : > { %4108 = vmatpush3.bf16.msra.mxu0 %v4107_v53  ;;  %4115 = vmatprep.subr.bf16.mxu1 %v4286_v33  ;;  %v3364_v40 = vrot.slane %v4642_v34, 6 }
0x141c   : > { %4109 = vmatprep.subr.bf16.mxu0 %v4286_v33  ;;  %3980 = vmatprep.mubr.msk.f32.mxu0 %vm4287_vm5, %v4288_v43  ;;  %v3289_v41 = vsel %vm2835_vm6, %v3288_v37, %v3287_v36 }
0x141d   : > { %3991 = vmatprep.mubr.msk.f32.mxu1 %vm4287_vm5, %v4288_v43  ;;  %v3365_v42 = vsel %vm2835_vm6, %v3364_v40, %v3363_v39 }
0x141e   : > { %4117 = vmatpush3.bf16.msra.mxu1 %v4116_v62 }
0x141f   : > { %4111 = vmatpush3.bf16.msra.mxu0 %v4110_v59  ;;  %4124 = vmatprep.subr.bf16.mxu1 %v4286_v33 }
0x1420   : > { %4118 = vmatprep.subr.bf16.mxu0 %v4286_v33 }
0x1421   : > { %3992 = vmatmul.mubr.msk.f32.vlgmr.msra.gmra.mrb[2].mxu1 %vm544_vm1, %v3061_v9 }
0x1422   : > { %3981 = vmatmul.mubr.msk.f32.vlgmr.msra.gmra.mrb[2].mxu0 %vm544_vm1, %v2985_v7  ;;  %4126 = vmatpush3.bf16.msra.mxu1 %v4125_v10 }
0x1423   : > { %4120 = vmatpush3.bf16.msra.mxu0 %v4119_v8  ;;  %4127 = vmatprep.subr.bf16.mxu1 %v4286_v33 }
0x1424   : > { %4121 = vmatprep.subr.bf16.mxu0 %v4286_v33  ;;  %4002 = vmatprep.mubr.msk.f32.mxu0 %vm4287_vm5, %v4288_v43 }
0x1425   : > { %4013 = vmatprep.mubr.msk.f32.mxu1 %vm4287_vm5, %v4288_v43 }
0x1426   : > { %4129 = vmatpush3.bf16.msra.mxu1 %v4128_v19 }
0x1427   : > { %4123 = vmatpush3.bf16.msra.mxu0 %v4122_v16  ;;  %4136 = vmatprep.subr.bf16.mxu1 %v4286_v33 }
0x1428   : > { %4130 = vmatprep.subr.bf16.mxu0 %v4286_v33 }
0x1429   : > { %4014 = vmatmul.mubr.msk.f32.vlgmr.msra.gmra.mrb[4].mxu1 %vm544_vm1, %v3213_v27 }
0x142a   : > { %4003 = vmatmul.mubr.msk.f32.vlgmr.msra.gmra.mrb[4].mxu0 %vm544_vm1, %v3137_v26  ;;  %4138 = vmatpush3.bf16.msra.mxu1 %v4137_v63 }
0x142b   : > { %4132 = vmatpush3.bf16.msra.mxu0 %v4131_v2  ;;  %4139 = vmatprep.subr.bf16.mxu1 %v4286_v33 }
0x142c   : > { %4133 = vmatprep.subr.bf16.mxu0 %v4286_v33  ;;  %4024 = vmatprep.mubr.msk.f32.mxu0 %vm4287_vm5, %v4288_v43 }
0x142d   : > { %4035 = vmatprep.mubr.msk.f32.mxu1 %vm4287_vm5, %v4288_v43 }
0x142e   : > { %4141 = vmatpush3.bf16.msra.mxu1 %v4140_v38 }
0x142f   : > { %4135 = vmatpush3.bf16.msra.mxu0 %v4134_v32 }
0x1431   : > { %4036 = vmatmul.mubr.msk.f32.vlgmr.msra.gmra.mrb[6].mxu1 %vm544_vm1, %v3365_v42 }
0x1432   : > { %4025 = vmatmul.mubr.msk.f32.vlgmr.msra.gmra.mrb[6].mxu0 %vm544_vm1, %v3289_v41 }
0x14ec   : > { %v2979_v44 = vpop.f32.mrb[0].mxu1 }
0x14ed   : > { %v2905_v35 = vpop.f32.mrb[0].mxu0  ;;  %v3971_v45 = vpop.f32.mrb[1].mxu1 }
0x14ee   : > { %v3960_v34 = vpop.f32.mrb[1].mxu0  ;;  %v2980_v33 = vadd.f32 %v2979_v44, %v2905_v35 }
0x14f4   : > { %v3130_v49 = vpop.f32.mrb[2].mxu1 }
0x14f5   : > { %v3054_v46 = vpop.f32.mrb[2].mxu0  ;;  %v3993_v43 = vpop.f32.mrb[3].mxu1 }
0x14f6   : > { %v3058_v47 = vadd.f32 %v3054_v46, %v2980_v33  ;;  %v3982_v48 = vpop.f32.mrb[3].mxu0 }
0x14f8   : > { %v3134_v50 = vadd.f32 %v3130_v49, %v3058_v47 }
0x14fc   : > { %v3282_v54 = vpop.f32.mrb[4].mxu1 }
0x14fd   : > { %v3206_v51 = vpop.f32.mrb[4].mxu0  ;;  %v4015_v4 = vpop.f32.mrb[5].mxu1 }
0x14fe   : > { %v3210_v52 = vadd.f32 %v3206_v51, %v3134_v50  ;;  %v4004_v53 = vpop.f32.mrb[5].mxu0 }
0x1500   : > { %v3286_v55 = vadd.f32 %v3282_v54, %v3210_v52 }
0x1504   : > { %v3434_v59 = vpop.f32.mrb[6].mxu1 }
0x1505   : > { %v3358_v56 = vpop.f32.mrb[6].mxu0  ;;  %v4037_v61 = vpop.f32.mrb[7].mxu1 }
0x1506   : > { %v3362_v57 = vadd.f32 %v3358_v56, %v3286_v55  ;;  %v4026_v58 = vpop.f32.mrb[7].mxu0 }
0x1508   : > { %v3438_v62 = vadd.f32 %v3434_v59, %v3362_v57 }
0x150a   : > { %v3446_v12 = vadd.f32 %v3643_v60, %v3438_v62 }
0x150c   : > { %3448 = vst.msk [vmem:[#allocation3] sm:$0x3] %vm3447_vm7, %v3446_v12 }
0x150d PF: > { %p4146_p6 = scmp.eq.s32.totalorder %s4361_s22, 1  ;;  %s4289_s30 = smov [#allocation3]  }
0x150e   : > { %s3456_s16 = sshll.u32 %s4289_s30, 4  ;;  %s3457_s16 = int_to_ptr.vmem [resolvable:$true] %s3456_s16 }
0x150f   : > { %s4241_s20 = scalar_lea.vmem %s3457_s16, 32  ;;  %p4248_p10 = scmp.lt.s32.totalorder %s3457_s16, %s3457_s16 }
0x1510   : > { %p4242_p7 = scmp.ne.s32.totalorder %s3457_s16, %s4241_s20  ;;  %p4249_p11 = scmp.lt.s32.totalorder %s4241_s20, %s4241_s20 }
0x1512   : > { %p4243_p8 = pnand %p4242_p7, %p4146_p6  ;;  %p4250_p12 = por %p4249_p11, %p4248_p10 }
0x1514   : > { %p4244_p9 = pneg %p4243_p8 }
0x1516   : > { %p4251_p13 = pnand %p4250_p12, %p4244_p9 }
0x1518   : > { %4254 = shalt.err (!%p4251_p13)
}
0x1519   : > { %s4860_s25 = sld [smem:[#allocation8_spill]] }
0x151f   : > { %s4255_s26 = scalar_lea.hbm %s4860_s25, 32 }
0x1520   : > { %p4256_p0 = scmp.ne.s32.totalorder %s4860_s25, %s4255_s26  ;;  %p4261_p3 = scmp.lt.u32.totalorder %s4255_s26, %s4860_s25 }
0x1522   : > { %p4257_p1 = pnand %p4256_p0, %p4146_p6 }
0x1524   : > { %p4258_p2 = pneg %p4257_p1 }
0x1526   : > { %p4263_p4 = pnand %p4261_p3, %p4258_p2 }
0x1528   : > { %4266 = shalt.err (!%p4263_p4)
}
0x1529   : > { %4143 = dma.vmem_to_hbm [thread:$0]  (%p4146_p6), %s3457_s16, 32, %s4860_s25, [#allocation4]  }
0x152a   : > { %4272 = dma.done.wait (%p4146_p6), [#allocation4], 32  }
0x152b   : > { %4274 = vsyncadd (%p4146_p6), [#allocation4], 4294967264 }
0x152c PF: > { %s4861_s12 = sld [smem:[#allocation6_spill]] }
0x1532   : > { %s23_s21 = sadd.s32 1, %s4861_s12  }
0x1533   : > { %p20_p5 = scmp.ge.s32.totalorder %s23_s21, 4  }
0x1535   :  { %22 = sbr.rel (!%p20_p5) target bundleno = 4 (0x4), region = 124 }
0x153c   :  { %3469 = vsyncpa [#allocation4], 1 }
0x153d   :  { %3471 = vsyncpa [#allocation4 + $0x1], 1 }

</bundles_post_ra>
